<compile_context>
chip_gen: v6e
topology: v6e:2x2x1
jax: 0.10.0
libtpu: 0.0.40
codegen_flags: <defaults>
</compile_context>

<pallas_src>
import functools

import jax
import jax.numpy as jnp
from jax.experimental import pallas as pl
from jax.experimental.pallas import tpu as pltpu

# ----------------------------- hyper params ---------------------------------
FEATURES_NUM = 4      # features_num
HIDDEN_SIZE  = 32     # hidden_size
NUM_LAYERS   = 2      # num_layers (kernel hard-codes the 2-layer LSTM)
LABEL_NUM    = 5      # len(label_classes)
BATCH        = 2
SEQ_LEN      = 8
OUT_PAD      = 128    # lane-dense padding of the final Linear output
BP           = 8      # batch rows padded to a full sublane tile

assert 4 * HIDDEN_SIZE == 128 and OUT_PAD == 128  # all pack-1 segments are 128 lanes


def _round8(n):
    return n + ((-n) % 8)


def _make_pack1_layout():
    """Sublane-aligned row layout of the single 128-lane-wide parameter pack."""
    sizes = [("wih0", FEATURES_NUM), ("whh0", HIDDEN_SIZE), ("b0", 1),
             ("wih1", HIDDEN_SIZE), ("whh1", HIDDEN_SIZE), ("b1", 1),
             ("w1", HIDDEN_SIZE), ("fb1", 1), ("w3", 256), ("fb3", 1)]
    lay, off = {}, 0
    for name, n in sizes:
        lay[name] = (off, n)
        off += _round8(n)
    return lay, off


PACK1_LAYOUT, PACK1_ROWS = _make_pack1_layout()   # 424 rows x 128 lanes
PACK2_ROWS = _round8(128 + 1)                     # w2 (128,256) + fb2 (1,256) -> 136


# ----------------------------- fused network kernel -------------------------
def net_kernel(x_ref,    # (T*B, D)       time-major, batch-padded input (f32)
               p1_ref,   # (PACK1_ROWS, 128) bf16 parameter pack
               p2_ref,   # (PACK2_ROWS, 256) bf16 parameter pack
               out_ref,  # (B, OUT_PAD)   f32
               *, T, B, H, lay):
    bf16 = jnp.bfloat16

    def seg(name, as_f32=False):
        o, n = lay[name]
        v = p1_ref[o:o + n, :]
        return v.astype(jnp.float32) if as_f32 else v

    wih0 = seg("wih0")                 # (D , 4H) bf16
    whh0 = seg("whh0")                 # (H , 4H) bf16
    b0   = seg("b0",  as_f32=True)     # (1 , 4H) f32
    wih1 = seg("wih1")                 # (H , 4H) bf16
    whh1 = seg("whh1")                 # (H , 4H) bf16
    b1   = seg("b1",  as_f32=True)
    w1   = seg("w1")                   # (H , 128) bf16
    fb1  = seg("fb1", as_f32=True)
    w3   = seg("w3")                   # (256, OUT_PAD) bf16
    fb3  = seg("fb3", as_f32=True)
    w2   = p2_ref[0:128, :]            # (128, 256) bf16
    fb2  = p2_ref[128:129, :].astype(jnp.float32)

    # Hoisted layer-0 input projection: one (T*B, D) @ (D, 4H) matmul + bias.
    xp0 = jnp.dot(x_ref[...].astype(bf16), wih0,
                  preferred_element_type=jnp.float32) + b0          # (T*B, 4H)

    def cell(z, c):
        # gate lane order [i | f | o | g]: one sigmoid over 0:3H, one tanh 3H:4H
        sig = jax.nn.sigmoid(z[:, :3 * H])
        g = jnp.tanh(z[:, 3 * H:])
        i = sig[:, :H]
        f = sig[:, H:2 * H]
        o = sig[:, 2 * H:3 * H]
        c_new = f * c + i * g
        h_new = o * jnp.tanh(c_new)
        return h_new, c_new

    h0 = jnp.zeros((B, H), jnp.float32)
    c0 = jnp.zeros((B, H), jnp.float32)
    h1 = jnp.zeros((B, H), jnp.float32)
    c1 = jnp.zeros((B, H), jnp.float32)

    # Interleaved 2-layer recurrence (fully unrolled, static indices): layer-1
    # step t runs as soon as h0_t exists, so layer-0 step t+1 can overlap it.
    for t in range(T):
        z0 = xp0[t * B:(t + 1) * B] + jnp.dot(
            h0.astype(bf16), whh0, preferred_element_type=jnp.float32)
        h0, c0 = cell(z0, c0)
        z1 = (b1
              + jnp.dot(h0.astype(bf16), wih1, preferred_element_type=jnp.float32)
              + jnp.dot(h1.astype(bf16), whh1, preferred_element_type=jnp.float32))
        h1, c1 = cell(z1, c1)
    # h1 == r_out[:, -1, :] (rows >= batch are padding garbage, sliced off later)

    # ---------------- FC head (Dropout = identity, eval mode) ----------------
    a1 = jnp.maximum(
        jnp.dot(h1.astype(bf16), w1, preferred_element_type=jnp.float32) + fb1, 0.0)
    a2 = jnp.maximum(
        jnp.dot(a1.astype(bf16), w2, preferred_element_type=jnp.float32) + fb2, 0.0)
    out_ref[...] = (
        jnp.dot(a2.astype(bf16), w3, preferred_element_type=jnp.float32)
        + fb3).astype(out_ref.dtype)


# ----------------------------- parameter setup ------------------------------
def init_params(key):
    """Random params in the kernel's gate-fused, lane-dense layout (f32)."""
    params = {"lstm": [], "fc": []}
    H = HIDDEN_SIZE
    k = 1.0 / jnp.sqrt(H)
    # PyTorch gate order along 4H is (i, f, g, o); pack as (i, f, o, g) so the
    # sigmoid gates are contiguous in lanes 0:3H and tanh covers 3H:4H.
    perm = jnp.array((0, 1, 3, 2), dtype=jnp.int32)

    for layer in range(NUM_LAYERS):
        d_in = FEATURES_NUM if layer == 0 else H
        key, k1, k2, k3, k4 = jax.random.split(key, 5)
        # PyTorch shapes: W_ih (4H, d_in), W_hh (4H, H), b_ih/b_hh (4H,)
        w_ih = jax.random.uniform(k1, (4 * H, d_in), jnp.float32, -k, k)
        w_hh = jax.random.uniform(k2, (4 * H, H), jnp.float32, -k, k)
        b_ih = jax.random.uniform(k3, (4 * H,), jnp.float32, -k, k)
        b_hh = jax.random.uniform(k4, (4 * H,), jnp.float32, -k, k)

        w_ih_g = w_ih.reshape(4, H, d_in)[perm]          # (4, H, d_in), order i,f,o,g
        w_hh_g = w_hh.reshape(4, H, H)[perm]             # (4, H, H)
        b_g = (b_ih + b_hh).reshape(4, H)[perm]          # (4, H)

        # Gate-fused kernel layout: x @ (d_in, 4H), h @ (H, 4H), bias (1, 4H).
        wih_k = jnp.transpose(w_ih_g, (2, 0, 1)).reshape(d_in, 4 * H)
        whh_k = jnp.transpose(w_hh_g, (2, 0, 1)).reshape(H, 4 * H)
        b_k = b_g.reshape(1, 4 * H)
        params["lstm"].append((wih_k, whh_k, b_k))

    # FC head: Linear(H,128), Linear(128,256), Linear(256,label_num) [padded].
    for d_in, d_out in [(H, 128), (128, 256)]:
        key, k1, k2 = jax.random.split(key, 3)
        bound = 1.0 / jnp.sqrt(d_in)
        w = jax.random.uniform(k1, (d_in, d_out), jnp.float32, -bound, bound)
        b = jax.random.uniform(k2, (1, d_out), jnp.float32, -bound, bound)
        params["fc"].append((w, b))

    key, k1, k2 = jax.random.split(key, 3)
    bound = 1.0 / jnp.sqrt(256)
    w3 = jax.random.uniform(k1, (256, LABEL_NUM), jnp.float32, -bound, bound)
    b3 = jax.random.uniform(k2, (1, LABEL_NUM), jnp.float32, -bound, bound)
    # Pad the final Linear lane-dense (128 output columns); wrapper slices back.
    w3p = jnp.zeros((256, OUT_PAD), jnp.float32).at[:, :LABEL_NUM].set(w3)
    b3p = jnp.zeros((1, OUT_PAD), jnp.float32).at[:, :LABEL_NUM].set(b3)
    params["fc"].append((w3p, b3p))
    return params


def pack_params(params):
    """Pack all 13 parameter tensors into two lane-dense bf16 blocks (2 DMAs)."""
    (wih0, whh0, b0), (wih1, whh1, b1) = params["lstm"]
    (w1, fb1), (w2, fb2), (w3, fb3) = params["fc"]
    by_name = dict(wih0=wih0, whh0=whh0, b0=b0, wih1=wih1, whh1=whh1, b1=b1,
                   w1=w1, fb1=fb1, w3=w3, fb3=fb3)

    pack1 = jnp.zeros((PACK1_ROWS, 4 * HIDDEN_SIZE), jnp.float32)
    for name, (off, n) in PACK1_LAYOUT.items():
        pack1 = pack1.at[off:off + n, :].set(by_name[name])

    pack2 = jnp.zeros((PACK2_ROWS, 256), jnp.float32)
    pack2 = pack2.at[0:128, :].set(w2)
    pack2 = pack2.at[128:129, :].set(fb2)
    return pack1.astype(jnp.bfloat16), pack2.astype(jnp.bfloat16)


# ----------------------------- full forward ---------------------------------
@jax.jit
def net_forward(x_bcl, pack1, pack2):
    # x_bcl: (batch, features, seq) -- matches the PyTorch input before swapaxes
    B, D, T = x_bcl.shape
    H = HIDDEN_SIZE
    x_btd = jnp.swapaxes(x_bcl, 2, 1)                       # (B, T, D) as in forward()
    # Pad batch rows to a full sublane tile (BP=8) -> all in-kernel row slices
    # and the final store are unmasked & aligned; padded rows are garbage and
    # get sliced off below.
    x_pad = jnp.zeros((BP, T, D), x_btd.dtype).at[:B].set(x_btd)
    x_flat = jnp.transpose(x_pad, (1, 0, 2)).reshape(T * BP, D)   # time-major rows

    kernel = functools.partial(net_kernel, T=T, B=BP, H=H, lay=PACK1_LAYOUT)
    out_pad = pl.pallas_call(
        kernel,
        out_shape=jax.ShapeDtypeStruct((BP, OUT_PAD), jnp.float32),
        in_specs=[pl.BlockSpec(memory_space=pltpu.MemorySpace.VMEM)] * 3,
        out_specs=pl.BlockSpec(memory_space=pltpu.MemorySpace.VMEM),
    )(x_flat, pack1, pack2)
    return out_pad[:B, :LABEL_NUM]


# ----------------------------- main ------------------------------------------
if __name__ == "__main__":
    key = jax.random.PRNGKey(0)
    key, xk = jax.random.split(key)
    # PyTorch input layout before swapaxes: (batch, features, seq)
    x = jax.random.normal(xk, (BATCH, FEATURES_NUM, SEQ_LEN), jnp.float32)

    params = init_params(key)
    pack1, pack2 = pack_params(params)

    out = net_forward(x, pack1, pack2)
    out = jax.block_until_ready(out)
    assert out.shape == (BATCH, LABEL_NUM), out.shape
    print("KERNEL_OK")
</pallas_src>

<mosaic_0001>
module attributes {stable_mosaic.version = 11 : i64} {
  func.func @net_kernel(%arg0: memref<64x4xf32, #tpu.memory_space<vmem>>, %arg1: memref<424x128xbf16, #tpu.memory_space<vmem>>, %arg2: memref<136x256xbf16, #tpu.memory_space<vmem>>, %arg3: memref<8x128xf32, #tpu.memory_space<vmem>>) attributes {dimension_semantics = [], scalar_prefetch = 0 : i64, scratch_operands = 0 : i64, tpu.core_type = #tpu.core_type<tc>} {
    %c0 = arith.constant 0 : index
    %c0_0 = arith.constant 0 : index
    %0 = vector.load %arg1[%c0, %c0_0] : memref<424x128xbf16, #tpu.memory_space<vmem>>, vector<4x128xbf16>
    %c8 = arith.constant 8 : index
    %c0_1 = arith.constant 0 : index
    %1 = vector.load %arg1[%c8, %c0_1] : memref<424x128xbf16, #tpu.memory_space<vmem>>, vector<32x128xbf16>
    %c40 = arith.constant 40 : index
    %c0_2 = arith.constant 0 : index
    %2 = vector.load %arg1[%c40, %c0_2] : memref<424x128xbf16, #tpu.memory_space<vmem>>, vector<1x128xbf16>
    %3 = arith.extf %2 : vector<1x128xbf16> to vector<1x128xf32>
    %c48 = arith.constant 48 : index
    %c0_3 = arith.constant 0 : index
    %4 = vector.load %arg1[%c48, %c0_3] : memref<424x128xbf16, #tpu.memory_space<vmem>>, vector<32x128xbf16>
    %c80 = arith.constant 80 : index
    %c0_4 = arith.constant 0 : index
    %5 = vector.load %arg1[%c80, %c0_4] : memref<424x128xbf16, #tpu.memory_space<vmem>>, vector<32x128xbf16>
    %c112 = arith.constant 112 : index
    %c0_5 = arith.constant 0 : index
    %6 = vector.load %arg1[%c112, %c0_5] : memref<424x128xbf16, #tpu.memory_space<vmem>>, vector<1x128xbf16>
    %7 = arith.extf %6 : vector<1x128xbf16> to vector<1x128xf32>
    %c120 = arith.constant 120 : index
    %c0_6 = arith.constant 0 : index
    %8 = vector.load %arg1[%c120, %c0_6] : memref<424x128xbf16, #tpu.memory_space<vmem>>, vector<32x128xbf16>
    %c152 = arith.constant 152 : index
    %c0_7 = arith.constant 0 : index
    %9 = vector.load %arg1[%c152, %c0_7] : memref<424x128xbf16, #tpu.memory_space<vmem>>, vector<1x128xbf16>
    %10 = arith.extf %9 : vector<1x128xbf16> to vector<1x128xf32>
    %c160 = arith.constant 160 : index
    %c0_8 = arith.constant 0 : index
    %11 = vector.load %arg1[%c160, %c0_8] : memref<424x128xbf16, #tpu.memory_space<vmem>>, vector<256x128xbf16>
    %c416 = arith.constant 416 : index
    %c0_9 = arith.constant 0 : index
    %12 = vector.load %arg1[%c416, %c0_9] : memref<424x128xbf16, #tpu.memory_space<vmem>>, vector<1x128xbf16>
    %13 = arith.extf %12 : vector<1x128xbf16> to vector<1x128xf32>
    %c0_10 = arith.constant 0 : index
    %c0_11 = arith.constant 0 : index
    %14 = vector.load %arg2[%c0_10, %c0_11] : memref<136x256xbf16, #tpu.memory_space<vmem>>, vector<128x256xbf16>
    %c128 = arith.constant 128 : index
    %c0_12 = arith.constant 0 : index
    %15 = vector.load %arg2[%c128, %c0_12] : memref<136x256xbf16, #tpu.memory_space<vmem>>, vector<1x256xbf16>
    %16 = arith.extf %15 : vector<1x256xbf16> to vector<1x256xf32>
    %c0_13 = arith.constant 0 : index
    %c0_14 = arith.constant 0 : index
    %17 = vector.load %arg0[%c0_13, %c0_14] : memref<64x4xf32, #tpu.memory_space<vmem>>, vector<64x4xf32>
    %18 = arith.truncf %17 : vector<64x4xf32> to vector<64x4xbf16>
    %cst = arith.constant dense<0.000000e+00> : vector<64x128xf32>
    %19 = tpu.matmul %18, %0, %cst {dimension_numbers = #tpu.dot_dimension_numbers<[1], [0], [0], [1], [0, 0, 1, 1], [], []>} : vector<64x4xbf16>, vector<4x128xbf16>, vector<64x128xf32> -> vector<64x128xf32>
    %20 = vector.broadcast %3 : vector<1x128xf32> to vector<64x128xf32>
    %21 = arith.addf %19, %20 : vector<64x128xf32>
    %cst_15 = arith.constant 0.000000e+00 : f32
    %22 = vector.broadcast %cst_15 : f32 to vector<8x32xf32>
    %cst_16 = arith.constant 0.000000e+00 : f32
    %23 = vector.broadcast %cst_16 : f32 to vector<8x32xf32>
    %cst_17 = arith.constant 0.000000e+00 : f32
    %24 = vector.broadcast %cst_17 : f32 to vector<8x32xf32>
    %cst_18 = arith.constant 0.000000e+00 : f32
    %25 = vector.broadcast %cst_18 : f32 to vector<8x32xf32>
    %26 = vector.extract_strided_slice %21 {offsets = [0, 0], sizes = [8, 128], strides = [1, 1]} : vector<64x128xf32> to vector<8x128xf32>
    %27 = arith.truncf %22 : vector<8x32xf32> to vector<8x32xbf16>
    %cst_19 = arith.constant dense<0.000000e+00> : vector<8x128xf32>
    %28 = tpu.matmul %27, %1, %cst_19 {dimension_numbers = #tpu.dot_dimension_numbers<[1], [0], [0], [1], [0, 0, 1, 1], [], []>} : vector<8x32xbf16>, vector<32x128xbf16>, vector<8x128xf32> -> vector<8x128xf32>
    %29 = arith.addf %26, %28 : vector<8x128xf32>
    %30 = vector.extract_strided_slice %29 {offsets = [0, 0], sizes = [8, 96], strides = [1, 1]} : vector<8x128xf32> to vector<8x96xf32>
    %31 = arith.negf %30 : vector<8x96xf32>
    %32 = math.exp %31 : vector<8x96xf32>
    %cst_20 = arith.constant 1.000000e+00 : f32
    %33 = vector.broadcast %cst_20 : f32 to vector<8x96xf32>
    %34 = arith.addf %33, %32 : vector<8x96xf32>
    %35 = arith.divf %33, %34 : vector<8x96xf32>
    %36 = vector.extract_strided_slice %29 {offsets = [0, 96], sizes = [8, 32], strides = [1, 1]} : vector<8x128xf32> to vector<8x32xf32>
    %37 = math.tanh %36 : vector<8x32xf32>
    %38 = vector.extract_strided_slice %35 {offsets = [0, 0], sizes = [8, 32], strides = [1, 1]} : vector<8x96xf32> to vector<8x32xf32>
    %39 = vector.extract_strided_slice %35 {offsets = [0, 32], sizes = [8, 32], strides = [1, 1]} : vector<8x96xf32> to vector<8x32xf32>
    %40 = vector.extract_strided_slice %35 {offsets = [0, 64], sizes = [8, 32], strides = [1, 1]} : vector<8x96xf32> to vector<8x32xf32>
    %41 = arith.mulf %39, %23 : vector<8x32xf32>
    %42 = arith.mulf %38, %37 : vector<8x32xf32>
    %43 = arith.addf %41, %42 : vector<8x32xf32>
    %44 = math.tanh %43 : vector<8x32xf32>
    %45 = arith.mulf %40, %44 : vector<8x32xf32>
    %46 = arith.truncf %45 : vector<8x32xf32> to vector<8x32xbf16>
    %cst_21 = arith.constant dense<0.000000e+00> : vector<8x128xf32>
    %47 = tpu.matmul %46, %4, %cst_21 {dimension_numbers = #tpu.dot_dimension_numbers<[1], [0], [0], [1], [0, 0, 1, 1], [], []>} : vector<8x32xbf16>, vector<32x128xbf16>, vector<8x128xf32> -> vector<8x128xf32>
    %48 = vector.broadcast %7 : vector<1x128xf32> to vector<8x128xf32>
    %49 = arith.addf %48, %47 : vector<8x128xf32>
    %50 = arith.truncf %24 : vector<8x32xf32> to vector<8x32xbf16>
    %cst_22 = arith.constant dense<0.000000e+00> : vector<8x128xf32>
    %51 = tpu.matmul %50, %5, %cst_22 {dimension_numbers = #tpu.dot_dimension_numbers<[1], [0], [0], [1], [0, 0, 1, 1], [], []>} : vector<8x32xbf16>, vector<32x128xbf16>, vector<8x128xf32> -> vector<8x128xf32>
    %52 = arith.addf %49, %51 : vector<8x128xf32>
    %53 = vector.extract_strided_slice %52 {offsets = [0, 0], sizes = [8, 96], strides = [1, 1]} : vector<8x128xf32> to vector<8x96xf32>
    %54 = arith.negf %53 : vector<8x96xf32>
    %55 = math.exp %54 : vector<8x96xf32>
    %cst_23 = arith.constant 1.000000e+00 : f32
    %56 = vector.broadcast %cst_23 : f32 to vector<8x96xf32>
    %57 = arith.addf %56, %55 : vector<8x96xf32>
    %58 = arith.divf %56, %57 : vector<8x96xf32>
    %59 = vector.extract_strided_slice %52 {offsets = [0, 96], sizes = [8, 32], strides = [1, 1]} : vector<8x128xf32> to vector<8x32xf32>
    %60 = math.tanh %59 : vector<8x32xf32>
    %61 = vector.extract_strided_slice %58 {offsets = [0, 0], sizes = [8, 32], strides = [1, 1]} : vector<8x96xf32> to vector<8x32xf32>
    %62 = vector.extract_strided_slice %58 {offsets = [0, 32], sizes = [8, 32], strides = [1, 1]} : vector<8x96xf32> to vector<8x32xf32>
    %63 = vector.extract_strided_slice %58 {offsets = [0, 64], sizes = [8, 32], strides = [1, 1]} : vector<8x96xf32> to vector<8x32xf32>
    %64 = arith.mulf %62, %25 : vector<8x32xf32>
    %65 = arith.mulf %61, %60 : vector<8x32xf32>
    %66 = arith.addf %64, %65 : vector<8x32xf32>
    %67 = math.tanh %66 : vector<8x32xf32>
    %68 = arith.mulf %63, %67 : vector<8x32xf32>
    %69 = vector.extract_strided_slice %21 {offsets = [8, 0], sizes = [8, 128], strides = [1, 1]} : vector<64x128xf32> to vector<8x128xf32>
    %70 = arith.truncf %45 : vector<8x32xf32> to vector<8x32xbf16>
    %cst_24 = arith.constant dense<0.000000e+00> : vector<8x128xf32>
    %71 = tpu.matmul %70, %1, %cst_24 {dimension_numbers = #tpu.dot_dimension_numbers<[1], [0], [0], [1], [0, 0, 1, 1], [], []>} : vector<8x32xbf16>, vector<32x128xbf16>, vector<8x128xf32> -> vector<8x128xf32>
    %72 = arith.addf %69, %71 : vector<8x128xf32>
    %73 = vector.extract_strided_slice %72 {offsets = [0, 0], sizes = [8, 96], strides = [1, 1]} : vector<8x128xf32> to vector<8x96xf32>
    %74 = arith.negf %73 : vector<8x96xf32>
    %75 = math.exp %74 : vector<8x96xf32>
    %cst_25 = arith.constant 1.000000e+00 : f32
    %76 = vector.broadcast %cst_25 : f32 to vector<8x96xf32>
    %77 = arith.addf %76, %75 : vector<8x96xf32>
    %78 = arith.divf %76, %77 : vector<8x96xf32>
    %79 = vector.extract_strided_slice %72 {offsets = [0, 96], sizes = [8, 32], strides = [1, 1]} : vector<8x128xf32> to vector<8x32xf32>
    %80 = math.tanh %79 : vector<8x32xf32>
    %81 = vector.extract_strided_slice %78 {offsets = [0, 0], sizes = [8, 32], strides = [1, 1]} : vector<8x96xf32> to vector<8x32xf32>
    %82 = vector.extract_strided_slice %78 {offsets = [0, 32], sizes = [8, 32], strides = [1, 1]} : vector<8x96xf32> to vector<8x32xf32>
    %83 = vector.extract_strided_slice %78 {offsets = [0, 64], sizes = [8, 32], strides = [1, 1]} : vector<8x96xf32> to vector<8x32xf32>
    %84 = arith.mulf %82, %43 : vector<8x32xf32>
    %85 = arith.mulf %81, %80 : vector<8x32xf32>
    %86 = arith.addf %84, %85 : vector<8x32xf32>
    %87 = math.tanh %86 : vector<8x32xf32>
    %88 = arith.mulf %83, %87 : vector<8x32xf32>
    %89 = arith.truncf %88 : vector<8x32xf32> to vector<8x32xbf16>
    %cst_26 = arith.constant dense<0.000000e+00> : vector<8x128xf32>
    %90 = tpu.matmul %89, %4, %cst_26 {dimension_numbers = #tpu.dot_dimension_numbers<[1], [0], [0], [1], [0, 0, 1, 1], [], []>} : vector<8x32xbf16>, vector<32x128xbf16>, vector<8x128xf32> -> vector<8x128xf32>
    %91 = vector.broadcast %7 : vector<1x128xf32> to vector<8x128xf32>
    %92 = arith.addf %91, %90 : vector<8x128xf32>
    %93 = arith.truncf %68 : vector<8x32xf32> to vector<8x32xbf16>
    %cst_27 = arith.constant dense<0.000000e+00> : vector<8x128xf32>
    %94 = tpu.matmul %93, %5, %cst_27 {dimension_numbers = #tpu.dot_dimension_numbers<[1], [0], [0], [1], [0, 0, 1, 1], [], []>} : vector<8x32xbf16>, vector<32x128xbf16>, vector<8x128xf32> -> vector<8x128xf32>
    %95 = arith.addf %92, %94 : vector<8x128xf32>
    %96 = vector.extract_strided_slice %95 {offsets = [0, 0], sizes = [8, 96], strides = [1, 1]} : vector<8x128xf32> to vector<8x96xf32>
    %97 = arith.negf %96 : vector<8x96xf32>
    %98 = math.exp %97 : vector<8x96xf32>
    %cst_28 = arith.constant 1.000000e+00 : f32
    %99 = vector.broadcast %cst_28 : f32 to vector<8x96xf32>
    %100 = arith.addf %99, %98 : vector<8x96xf32>
    %101 = arith.divf %99, %100 : vector<8x96xf32>
    %102 = vector.extract_strided_slice %95 {offsets = [0, 96], sizes = [8, 32], strides = [1, 1]} : vector<8x128xf32> to vector<8x32xf32>
    %103 = math.tanh %102 : vector<8x32xf32>
    %104 = vector.extract_strided_slice %101 {offsets = [0, 0], sizes = [8, 32], strides = [1, 1]} : vector<8x96xf32> to vector<8x32xf32>
    %105 = vector.extract_strided_slice %101 {offsets = [0, 32], sizes = [8, 32], strides = [1, 1]} : vector<8x96xf32> to vector<8x32xf32>
    %106 = vector.extract_strided_slice %101 {offsets = [0, 64], sizes = [8, 32], strides = [1, 1]} : vector<8x96xf32> to vector<8x32xf32>
    %107 = arith.mulf %105, %66 : vector<8x32xf32>
    %108 = arith.mulf %104, %103 : vector<8x32xf32>
    %109 = arith.addf %107, %108 : vector<8x32xf32>
    %110 = math.tanh %109 : vector<8x32xf32>
    %111 = arith.mulf %106, %110 : vector<8x32xf32>
    %112 = vector.extract_strided_slice %21 {offsets = [16, 0], sizes = [8, 128], strides = [1, 1]} : vector<64x128xf32> to vector<8x128xf32>
    %113 = arith.truncf %88 : vector<8x32xf32> to vector<8x32xbf16>
    %cst_29 = arith.constant dense<0.000000e+00> : vector<8x128xf32>
    %114 = tpu.matmul %113, %1, %cst_29 {dimension_numbers = #tpu.dot_dimension_numbers<[1], [0], [0], [1], [0, 0, 1, 1], [], []>} : vector<8x32xbf16>, vector<32x128xbf16>, vector<8x128xf32> -> vector<8x128xf32>
    %115 = arith.addf %112, %114 : vector<8x128xf32>
    %116 = vector.extract_strided_slice %115 {offsets = [0, 0], sizes = [8, 96], strides = [1, 1]} : vector<8x128xf32> to vector<8x96xf32>
    %117 = arith.negf %116 : vector<8x96xf32>
    %118 = math.exp %117 : vector<8x96xf32>
    %cst_30 = arith.constant 1.000000e+00 : f32
    %119 = vector.broadcast %cst_30 : f32 to vector<8x96xf32>
    %120 = arith.addf %119, %118 : vector<8x96xf32>
    %121 = arith.divf %119, %120 : vector<8x96xf32>
    %122 = vector.extract_strided_slice %115 {offsets = [0, 96], sizes = [8, 32], strides = [1, 1]} : vector<8x128xf32> to vector<8x32xf32>
    %123 = math.tanh %122 : vector<8x32xf32>
    %124 = vector.extract_strided_slice %121 {offsets = [0, 0], sizes = [8, 32], strides = [1, 1]} : vector<8x96xf32> to vector<8x32xf32>
    %125 = vector.extract_strided_slice %121 {offsets = [0, 32], sizes = [8, 32], strides = [1, 1]} : vector<8x96xf32> to vector<8x32xf32>
    %126 = vector.extract_strided_slice %121 {offsets = [0, 64], sizes = [8, 32], strides = [1, 1]} : vector<8x96xf32> to vector<8x32xf32>
    %127 = arith.mulf %125, %86 : vector<8x32xf32>
    %128 = arith.mulf %124, %123 : vector<8x32xf32>
    %129 = arith.addf %127, %128 : vector<8x32xf32>
    %130 = math.tanh %129 : vector<8x32xf32>
    %131 = arith.mulf %126, %130 : vector<8x32xf32>
    %132 = arith.truncf %131 : vector<8x32xf32> to vector<8x32xbf16>
    %cst_31 = arith.constant dense<0.000000e+00> : vector<8x128xf32>
    %133 = tpu.matmul %132, %4, %cst_31 {dimension_numbers = #tpu.dot_dimension_numbers<[1], [0], [0], [1], [0, 0, 1, 1], [], []>} : vector<8x32xbf16>, vector<32x128xbf16>, vector<8x128xf32> -> vector<8x128xf32>
    %134 = vector.broadcast %7 : vector<1x128xf32> to vector<8x128xf32>
    %135 = arith.addf %134, %133 : vector<8x128xf32>
    %136 = arith.truncf %111 : vector<8x32xf32> to vector<8x32xbf16>
    %cst_32 = arith.constant dense<0.000000e+00> : vector<8x128xf32>
    %137 = tpu.matmul %136, %5, %cst_32 {dimension_numbers = #tpu.dot_dimension_numbers<[1], [0], [0], [1], [0, 0, 1, 1], [], []>} : vector<8x32xbf16>, vector<32x128xbf16>, vector<8x128xf32> -> vector<8x128xf32>
    %138 = arith.addf %135, %137 : vector<8x128xf32>
    %139 = vector.extract_strided_slice %138 {offsets = [0, 0], sizes = [8, 96], strides = [1, 1]} : vector<8x128xf32> to vector<8x96xf32>
    %140 = arith.negf %139 : vector<8x96xf32>
    %141 = math.exp %140 : vector<8x96xf32>
    %cst_33 = arith.constant 1.000000e+00 : f32
    %142 = vector.broadcast %cst_33 : f32 to vector<8x96xf32>
    %143 = arith.addf %142, %141 : vector<8x96xf32>
    %144 = arith.divf %142, %143 : vector<8x96xf32>
    %145 = vector.extract_strided_slice %138 {offsets = [0, 96], sizes = [8, 32], strides = [1, 1]} : vector<8x128xf32> to vector<8x32xf32>
    %146 = math.tanh %145 : vector<8x32xf32>
    %147 = vector.extract_strided_slice %144 {offsets = [0, 0], sizes = [8, 32], strides = [1, 1]} : vector<8x96xf32> to vector<8x32xf32>
    %148 = vector.extract_strided_slice %144 {offsets = [0, 32], sizes = [8, 32], strides = [1, 1]} : vector<8x96xf32> to vector<8x32xf32>
    %149 = vector.extract_strided_slice %144 {offsets = [0, 64], sizes = [8, 32], strides = [1, 1]} : vector<8x96xf32> to vector<8x32xf32>
    %150 = arith.mulf %148, %109 : vector<8x32xf32>
    %151 = arith.mulf %147, %146 : vector<8x32xf32>
    %152 = arith.addf %150, %151 : vector<8x32xf32>
    %153 = math.tanh %152 : vector<8x32xf32>
    %154 = arith.mulf %149, %153 : vector<8x32xf32>
    %155 = vector.extract_strided_slice %21 {offsets = [24, 0], sizes = [8, 128], strides = [1, 1]} : vector<64x128xf32> to vector<8x128xf32>
    %156 = arith.truncf %131 : vector<8x32xf32> to vector<8x32xbf16>
    %cst_34 = arith.constant dense<0.000000e+00> : vector<8x128xf32>
    %157 = tpu.matmul %156, %1, %cst_34 {dimension_numbers = #tpu.dot_dimension_numbers<[1], [0], [0], [1], [0, 0, 1, 1], [], []>} : vector<8x32xbf16>, vector<32x128xbf16>, vector<8x128xf32> -> vector<8x128xf32>
    %158 = arith.addf %155, %157 : vector<8x128xf32>
    %159 = vector.extract_strided_slice %158 {offsets = [0, 0], sizes = [8, 96], strides = [1, 1]} : vector<8x128xf32> to vector<8x96xf32>
    %160 = arith.negf %159 : vector<8x96xf32>
    %161 = math.exp %160 : vector<8x96xf32>
    %cst_35 = arith.constant 1.000000e+00 : f32
    %162 = vector.broadcast %cst_35 : f32 to vector<8x96xf32>
    %163 = arith.addf %162, %161 : vector<8x96xf32>
    %164 = arith.divf %162, %163 : vector<8x96xf32>
    %165 = vector.extract_strided_slice %158 {offsets = [0, 96], sizes = [8, 32], strides = [1, 1]} : vector<8x128xf32> to vector<8x32xf32>
    %166 = math.tanh %165 : vector<8x32xf32>
    %167 = vector.extract_strided_slice %164 {offsets = [0, 0], sizes = [8, 32], strides = [1, 1]} : vector<8x96xf32> to vector<8x32xf32>
    %168 = vector.extract_strided_slice %164 {offsets = [0, 32], sizes = [8, 32], strides = [1, 1]} : vector<8x96xf32> to vector<8x32xf32>
    %169 = vector.extract_strided_slice %164 {offsets = [0, 64], sizes = [8, 32], strides = [1, 1]} : vector<8x96xf32> to vector<8x32xf32>
    %170 = arith.mulf %168, %129 : vector<8x32xf32>
    %171 = arith.mulf %167, %166 : vector<8x32xf32>
    %172 = arith.addf %170, %171 : vector<8x32xf32>
    %173 = math.tanh %172 : vector<8x32xf32>
    %174 = arith.mulf %169, %173 : vector<8x32xf32>
    %175 = arith.truncf %174 : vector<8x32xf32> to vector<8x32xbf16>
    %cst_36 = arith.constant dense<0.000000e+00> : vector<8x128xf32>
    %176 = tpu.matmul %175, %4, %cst_36 {dimension_numbers = #tpu.dot_dimension_numbers<[1], [0], [0], [1], [0, 0, 1, 1], [], []>} : vector<8x32xbf16>, vector<32x128xbf16>, vector<8x128xf32> -> vector<8x128xf32>
    %177 = vector.broadcast %7 : vector<1x128xf32> to vector<8x128xf32>
    %178 = arith.addf %177, %176 : vector<8x128xf32>
    %179 = arith.truncf %154 : vector<8x32xf32> to vector<8x32xbf16>
    %cst_37 = arith.constant dense<0.000000e+00> : vector<8x128xf32>
    %180 = tpu.matmul %179, %5, %cst_37 {dimension_numbers = #tpu.dot_dimension_numbers<[1], [0], [0], [1], [0, 0, 1, 1], [], []>} : vector<8x32xbf16>, vector<32x128xbf16>, vector<8x128xf32> -> vector<8x128xf32>
    %181 = arith.addf %178, %180 : vector<8x128xf32>
    %182 = vector.extract_strided_slice %181 {offsets = [0, 0], sizes = [8, 96], strides = [1, 1]} : vector<8x128xf32> to vector<8x96xf32>
    %183 = arith.negf %182 : vector<8x96xf32>
    %184 = math.exp %183 : vector<8x96xf32>
    %cst_38 = arith.constant 1.000000e+00 : f32
    %185 = vector.broadcast %cst_38 : f32 to vector<8x96xf32>
    %186 = arith.addf %185, %184 : vector<8x96xf32>
    %187 = arith.divf %185, %186 : vector<8x96xf32>
    %188 = vector.extract_strided_slice %181 {offsets = [0, 96], sizes = [8, 32], strides = [1, 1]} : vector<8x128xf32> to vector<8x32xf32>
    %189 = math.tanh %188 : vector<8x32xf32>
    %190 = vector.extract_strided_slice %187 {offsets = [0, 0], sizes = [8, 32], strides = [1, 1]} : vector<8x96xf32> to vector<8x32xf32>
    %191 = vector.extract_strided_slice %187 {offsets = [0, 32], sizes = [8, 32], strides = [1, 1]} : vector<8x96xf32> to vector<8x32xf32>
    %192 = vector.extract_strided_slice %187 {offsets = [0, 64], sizes = [8, 32], strides = [1, 1]} : vector<8x96xf32> to vector<8x32xf32>
    %193 = arith.mulf %191, %152 : vector<8x32xf32>
    %194 = arith.mulf %190, %189 : vector<8x32xf32>
    %195 = arith.addf %193, %194 : vector<8x32xf32>
    %196 = math.tanh %195 : vector<8x32xf32>
    %197 = arith.mulf %192, %196 : vector<8x32xf32>
    %198 = vector.extract_strided_slice %21 {offsets = [32, 0], sizes = [8, 128], strides = [1, 1]} : vector<64x128xf32> to vector<8x128xf32>
    %199 = arith.truncf %174 : vector<8x32xf32> to vector<8x32xbf16>
    %cst_39 = arith.constant dense<0.000000e+00> : vector<8x128xf32>
    %200 = tpu.matmul %199, %1, %cst_39 {dimension_numbers = #tpu.dot_dimension_numbers<[1], [0], [0], [1], [0, 0, 1, 1], [], []>} : vector<8x32xbf16>, vector<32x128xbf16>, vector<8x128xf32> -> vector<8x128xf32>
    %201 = arith.addf %198, %200 : vector<8x128xf32>
    %202 = vector.extract_strided_slice %201 {offsets = [0, 0], sizes = [8, 96], strides = [1, 1]} : vector<8x128xf32> to vector<8x96xf32>
    %203 = arith.negf %202 : vector<8x96xf32>
    %204 = math.exp %203 : vector<8x96xf32>
    %cst_40 = arith.constant 1.000000e+00 : f32
    %205 = vector.broadcast %cst_40 : f32 to vector<8x96xf32>
    %206 = arith.addf %205, %204 : vector<8x96xf32>
    %207 = arith.divf %205, %206 : vector<8x96xf32>
    %208 = vector.extract_strided_slice %201 {offsets = [0, 96], sizes = [8, 32], strides = [1, 1]} : vector<8x128xf32> to vector<8x32xf32>
    %209 = math.tanh %208 : vector<8x32xf32>
    %210 = vector.extract_strided_slice %207 {offsets = [0, 0], sizes = [8, 32], strides = [1, 1]} : vector<8x96xf32> to vector<8x32xf32>
    %211 = vector.extract_strided_slice %207 {offsets = [0, 32], sizes = [8, 32], strides = [1, 1]} : vector<8x96xf32> to vector<8x32xf32>
    %212 = vector.extract_strided_slice %207 {offsets = [0, 64], sizes = [8, 32], strides = [1, 1]} : vector<8x96xf32> to vector<8x32xf32>
    %213 = arith.mulf %211, %172 : vector<8x32xf32>
    %214 = arith.mulf %210, %209 : vector<8x32xf32>
    %215 = arith.addf %213, %214 : vector<8x32xf32>
    %216 = math.tanh %215 : vector<8x32xf32>
    %217 = arith.mulf %212, %216 : vector<8x32xf32>
    %218 = arith.truncf %217 : vector<8x32xf32> to vector<8x32xbf16>
    %cst_41 = arith.constant dense<0.000000e+00> : vector<8x128xf32>
    %219 = tpu.matmul %218, %4, %cst_41 {dimension_numbers = #tpu.dot_dimension_numbers<[1], [0], [0], [1], [0, 0, 1, 1], [], []>} : vector<8x32xbf16>, vector<32x128xbf16>, vector<8x128xf32> -> vector<8x128xf32>
    %220 = vector.broadcast %7 : vector<1x128xf32> to vector<8x128xf32>
    %221 = arith.addf %220, %219 : vector<8x128xf32>
    %222 = arith.truncf %197 : vector<8x32xf32> to vector<8x32xbf16>
    %cst_42 = arith.constant dense<0.000000e+00> : vector<8x128xf32>
    %223 = tpu.matmul %222, %5, %cst_42 {dimension_numbers = #tpu.dot_dimension_numbers<[1], [0], [0], [1], [0, 0, 1, 1], [], []>} : vector<8x32xbf16>, vector<32x128xbf16>, vector<8x128xf32> -> vector<8x128xf32>
    %224 = arith.addf %221, %223 : vector<8x128xf32>
    %225 = vector.extract_strided_slice %224 {offsets = [0, 0], sizes = [8, 96], strides = [1, 1]} : vector<8x128xf32> to vector<8x96xf32>
    %226 = arith.negf %225 : vector<8x96xf32>
    %227 = math.exp %226 : vector<8x96xf32>
    %cst_43 = arith.constant 1.000000e+00 : f32
    %228 = vector.broadcast %cst_43 : f32 to vector<8x96xf32>
    %229 = arith.addf %228, %227 : vector<8x96xf32>
    %230 = arith.divf %228, %229 : vector<8x96xf32>
    %231 = vector.extract_strided_slice %224 {offsets = [0, 96], sizes = [8, 32], strides = [1, 1]} : vector<8x128xf32> to vector<8x32xf32>
    %232 = math.tanh %231 : vector<8x32xf32>
    %233 = vector.extract_strided_slice %230 {offsets = [0, 0], sizes = [8, 32], strides = [1, 1]} : vector<8x96xf32> to vector<8x32xf32>
    %234 = vector.extract_strided_slice %230 {offsets = [0, 32], sizes = [8, 32], strides = [1, 1]} : vector<8x96xf32> to vector<8x32xf32>
    %235 = vector.extract_strided_slice %230 {offsets = [0, 64], sizes = [8, 32], strides = [1, 1]} : vector<8x96xf32> to vector<8x32xf32>
    %236 = arith.mulf %234, %195 : vector<8x32xf32>
    %237 = arith.mulf %233, %232 : vector<8x32xf32>
    %238 = arith.addf %236, %237 : vector<8x32xf32>
    %239 = math.tanh %238 : vector<8x32xf32>
    %240 = arith.mulf %235, %239 : vector<8x32xf32>
    %241 = vector.extract_strided_slice %21 {offsets = [40, 0], sizes = [8, 128], strides = [1, 1]} : vector<64x128xf32> to vector<8x128xf32>
    %242 = arith.truncf %217 : vector<8x32xf32> to vector<8x32xbf16>
    %cst_44 = arith.constant dense<0.000000e+00> : vector<8x128xf32>
    %243 = tpu.matmul %242, %1, %cst_44 {dimension_numbers = #tpu.dot_dimension_numbers<[1], [0], [0], [1], [0, 0, 1, 1], [], []>} : vector<8x32xbf16>, vector<32x128xbf16>, vector<8x128xf32> -> vector<8x128xf32>
    %244 = arith.addf %241, %243 : vector<8x128xf32>
    %245 = vector.extract_strided_slice %244 {offsets = [0, 0], sizes = [8, 96], strides = [1, 1]} : vector<8x128xf32> to vector<8x96xf32>
    %246 = arith.negf %245 : vector<8x96xf32>
    %247 = math.exp %246 : vector<8x96xf32>
    %cst_45 = arith.constant 1.000000e+00 : f32
    %248 = vector.broadcast %cst_45 : f32 to vector<8x96xf32>
    %249 = arith.addf %248, %247 : vector<8x96xf32>
    %250 = arith.divf %248, %249 : vector<8x96xf32>
    %251 = vector.extract_strided_slice %244 {offsets = [0, 96], sizes = [8, 32], strides = [1, 1]} : vector<8x128xf32> to vector<8x32xf32>
    %252 = math.tanh %251 : vector<8x32xf32>
    %253 = vector.extract_strided_slice %250 {offsets = [0, 0], sizes = [8, 32], strides = [1, 1]} : vector<8x96xf32> to vector<8x32xf32>
    %254 = vector.extract_strided_slice %250 {offsets = [0, 32], sizes = [8, 32], strides = [1, 1]} : vector<8x96xf32> to vector<8x32xf32>
    %255 = vector.extract_strided_slice %250 {offsets = [0, 64], sizes = [8, 32], strides = [1, 1]} : vector<8x96xf32> to vector<8x32xf32>
    %256 = arith.mulf %254, %215 : vector<8x32xf32>
    %257 = arith.mulf %253, %252 : vector<8x32xf32>
    %258 = arith.addf %256, %257 : vector<8x32xf32>
    %259 = math.tanh %258 : vector<8x32xf32>
    %260 = arith.mulf %255, %259 : vector<8x32xf32>
    %261 = arith.truncf %260 : vector<8x32xf32> to vector<8x32xbf16>
    %cst_46 = arith.constant dense<0.000000e+00> : vector<8x128xf32>
    %262 = tpu.matmul %261, %4, %cst_46 {dimension_numbers = #tpu.dot_dimension_numbers<[1], [0], [0], [1], [0, 0, 1, 1], [], []>} : vector<8x32xbf16>, vector<32x128xbf16>, vector<8x128xf32> -> vector<8x128xf32>
    %263 = vector.broadcast %7 : vector<1x128xf32> to vector<8x128xf32>
    %264 = arith.addf %263, %262 : vector<8x128xf32>
    %265 = arith.truncf %240 : vector<8x32xf32> to vector<8x32xbf16>
    %cst_47 = arith.constant dense<0.000000e+00> : vector<8x128xf32>
    %266 = tpu.matmul %265, %5, %cst_47 {dimension_numbers = #tpu.dot_dimension_numbers<[1], [0], [0], [1], [0, 0, 1, 1], [], []>} : vector<8x32xbf16>, vector<32x128xbf16>, vector<8x128xf32> -> vector<8x128xf32>
    %267 = arith.addf %264, %266 : vector<8x128xf32>
    %268 = vector.extract_strided_slice %267 {offsets = [0, 0], sizes = [8, 96], strides = [1, 1]} : vector<8x128xf32> to vector<8x96xf32>
    %269 = arith.negf %268 : vector<8x96xf32>
    %270 = math.exp %269 : vector<8x96xf32>
    %cst_48 = arith.constant 1.000000e+00 : f32
    %271 = vector.broadcast %cst_48 : f32 to vector<8x96xf32>
    %272 = arith.addf %271, %270 : vector<8x96xf32>
    %273 = arith.divf %271, %272 : vector<8x96xf32>
    %274 = vector.extract_strided_slice %267 {offsets = [0, 96], sizes = [8, 32], strides = [1, 1]} : vector<8x128xf32> to vector<8x32xf32>
    %275 = math.tanh %274 : vector<8x32xf32>
    %276 = vector.extract_strided_slice %273 {offsets = [0, 0], sizes = [8, 32], strides = [1, 1]} : vector<8x96xf32> to vector<8x32xf32>
    %277 = vector.extract_strided_slice %273 {offsets = [0, 32], sizes = [8, 32], strides = [1, 1]} : vector<8x96xf32> to vector<8x32xf32>
    %278 = vector.extract_strided_slice %273 {offsets = [0, 64], sizes = [8, 32], strides = [1, 1]} : vector<8x96xf32> to vector<8x32xf32>
    %279 = arith.mulf %277, %238 : vector<8x32xf32>
    %280 = arith.mulf %276, %275 : vector<8x32xf32>
    %281 = arith.addf %279, %280 : vector<8x32xf32>
    %282 = math.tanh %281 : vector<8x32xf32>
    %283 = arith.mulf %278, %282 : vector<8x32xf32>
    %284 = vector.extract_strided_slice %21 {offsets = [48, 0], sizes = [8, 128], strides = [1, 1]} : vector<64x128xf32> to vector<8x128xf32>
    %285 = arith.truncf %260 : vector<8x32xf32> to vector<8x32xbf16>
    %cst_49 = arith.constant dense<0.000000e+00> : vector<8x128xf32>
    %286 = tpu.matmul %285, %1, %cst_49 {dimension_numbers = #tpu.dot_dimension_numbers<[1], [0], [0], [1], [0, 0, 1, 1], [], []>} : vector<8x32xbf16>, vector<32x128xbf16>, vector<8x128xf32> -> vector<8x128xf32>
    %287 = arith.addf %284, %286 : vector<8x128xf32>
    %288 = vector.extract_strided_slice %287 {offsets = [0, 0], sizes = [8, 96], strides = [1, 1]} : vector<8x128xf32> to vector<8x96xf32>
    %289 = arith.negf %288 : vector<8x96xf32>
    %290 = math.exp %289 : vector<8x96xf32>
    %cst_50 = arith.constant 1.000000e+00 : f32
    %291 = vector.broadcast %cst_50 : f32 to vector<8x96xf32>
    %292 = arith.addf %291, %290 : vector<8x96xf32>
    %293 = arith.divf %291, %292 : vector<8x96xf32>
    %294 = vector.extract_strided_slice %287 {offsets = [0, 96], sizes = [8, 32], strides = [1, 1]} : vector<8x128xf32> to vector<8x32xf32>
    %295 = math.tanh %294 : vector<8x32xf32>
    %296 = vector.extract_strided_slice %293 {offsets = [0, 0], sizes = [8, 32], strides = [1, 1]} : vector<8x96xf32> to vector<8x32xf32>
    %297 = vector.extract_strided_slice %293 {offsets = [0, 32], sizes = [8, 32], strides = [1, 1]} : vector<8x96xf32> to vector<8x32xf32>
    %298 = vector.extract_strided_slice %293 {offsets = [0, 64], sizes = [8, 32], strides = [1, 1]} : vector<8x96xf32> to vector<8x32xf32>
    %299 = arith.mulf %297, %258 : vector<8x32xf32>
    %300 = arith.mulf %296, %295 : vector<8x32xf32>
    %301 = arith.addf %299, %300 : vector<8x32xf32>
    %302 = math.tanh %301 : vector<8x32xf32>
    %303 = arith.mulf %298, %302 : vector<8x32xf32>
    %304 = arith.truncf %303 : vector<8x32xf32> to vector<8x32xbf16>
    %cst_51 = arith.constant dense<0.000000e+00> : vector<8x128xf32>
    %305 = tpu.matmul %304, %4, %cst_51 {dimension_numbers = #tpu.dot_dimension_numbers<[1], [0], [0], [1], [0, 0, 1, 1], [], []>} : vector<8x32xbf16>, vector<32x128xbf16>, vector<8x128xf32> -> vector<8x128xf32>
    %306 = vector.broadcast %7 : vector<1x128xf32> to vector<8x128xf32>
    %307 = arith.addf %306, %305 : vector<8x128xf32>
    %308 = arith.truncf %283 : vector<8x32xf32> to vector<8x32xbf16>
    %cst_52 = arith.constant dense<0.000000e+00> : vector<8x128xf32>
    %309 = tpu.matmul %308, %5, %cst_52 {dimension_numbers = #tpu.dot_dimension_numbers<[1], [0], [0], [1], [0, 0, 1, 1], [], []>} : vector<8x32xbf16>, vector<32x128xbf16>, vector<8x128xf32> -> vector<8x128xf32>
    %310 = arith.addf %307, %309 : vector<8x128xf32>
    %311 = vector.extract_strided_slice %310 {offsets = [0, 0], sizes = [8, 96], strides = [1, 1]} : vector<8x128xf32> to vector<8x96xf32>
    %312 = arith.negf %311 : vector<8x96xf32>
    %313 = math.exp %312 : vector<8x96xf32>
    %cst_53 = arith.constant 1.000000e+00 : f32
    %314 = vector.broadcast %cst_53 : f32 to vector<8x96xf32>
    %315 = arith.addf %314, %313 : vector<8x96xf32>
    %316 = arith.divf %314, %315 : vector<8x96xf32>
    %317 = vector.extract_strided_slice %310 {offsets = [0, 96], sizes = [8, 32], strides = [1, 1]} : vector<8x128xf32> to vector<8x32xf32>
    %318 = math.tanh %317 : vector<8x32xf32>
    %319 = vector.extract_strided_slice %316 {offsets = [0, 0], sizes = [8, 32], strides = [1, 1]} : vector<8x96xf32> to vector<8x32xf32>
    %320 = vector.extract_strided_slice %316 {offsets = [0, 32], sizes = [8, 32], strides = [1, 1]} : vector<8x96xf32> to vector<8x32xf32>
    %321 = vector.extract_strided_slice %316 {offsets = [0, 64], sizes = [8, 32], strides = [1, 1]} : vector<8x96xf32> to vector<8x32xf32>
    %322 = arith.mulf %320, %281 : vector<8x32xf32>
    %323 = arith.mulf %319, %318 : vector<8x32xf32>
    %324 = arith.addf %322, %323 : vector<8x32xf32>
    %325 = math.tanh %324 : vector<8x32xf32>
    %326 = arith.mulf %321, %325 : vector<8x32xf32>
    %327 = vector.extract_strided_slice %21 {offsets = [56, 0], sizes = [8, 128], strides = [1, 1]} : vector<64x128xf32> to vector<8x128xf32>
    %328 = arith.truncf %303 : vector<8x32xf32> to vector<8x32xbf16>
    %cst_54 = arith.constant dense<0.000000e+00> : vector<8x128xf32>
    %329 = tpu.matmul %328, %1, %cst_54 {dimension_numbers = #tpu.dot_dimension_numbers<[1], [0], [0], [1], [0, 0, 1, 1], [], []>} : vector<8x32xbf16>, vector<32x128xbf16>, vector<8x128xf32> -> vector<8x128xf32>
    %330 = arith.addf %327, %329 : vector<8x128xf32>
    %331 = vector.extract_strided_slice %330 {offsets = [0, 0], sizes = [8, 96], strides = [1, 1]} : vector<8x128xf32> to vector<8x96xf32>
    %332 = arith.negf %331 : vector<8x96xf32>
    %333 = math.exp %332 : vector<8x96xf32>
    %cst_55 = arith.constant 1.000000e+00 : f32
    %334 = vector.broadcast %cst_55 : f32 to vector<8x96xf32>
    %335 = arith.addf %334, %333 : vector<8x96xf32>
    %336 = arith.divf %334, %335 : vector<8x96xf32>
    %337 = vector.extract_strided_slice %330 {offsets = [0, 96], sizes = [8, 32], strides = [1, 1]} : vector<8x128xf32> to vector<8x32xf32>
    %338 = math.tanh %337 : vector<8x32xf32>
    %339 = vector.extract_strided_slice %336 {offsets = [0, 0], sizes = [8, 32], strides = [1, 1]} : vector<8x96xf32> to vector<8x32xf32>
    %340 = vector.extract_strided_slice %336 {offsets = [0, 32], sizes = [8, 32], strides = [1, 1]} : vector<8x96xf32> to vector<8x32xf32>
    %341 = vector.extract_strided_slice %336 {offsets = [0, 64], sizes = [8, 32], strides = [1, 1]} : vector<8x96xf32> to vector<8x32xf32>
    %342 = arith.mulf %340, %301 : vector<8x32xf32>
    %343 = arith.mulf %339, %338 : vector<8x32xf32>
    %344 = arith.addf %342, %343 : vector<8x32xf32>
    %345 = math.tanh %344 : vector<8x32xf32>
    %346 = arith.mulf %341, %345 : vector<8x32xf32>
    %347 = arith.truncf %346 : vector<8x32xf32> to vector<8x32xbf16>
    %cst_56 = arith.constant dense<0.000000e+00> : vector<8x128xf32>
    %348 = tpu.matmul %347, %4, %cst_56 {dimension_numbers = #tpu.dot_dimension_numbers<[1], [0], [0], [1], [0, 0, 1, 1], [], []>} : vector<8x32xbf16>, vector<32x128xbf16>, vector<8x128xf32> -> vector<8x128xf32>
    %349 = vector.broadcast %7 : vector<1x128xf32> to vector<8x128xf32>
    %350 = arith.addf %349, %348 : vector<8x128xf32>
    %351 = arith.truncf %326 : vector<8x32xf32> to vector<8x32xbf16>
    %cst_57 = arith.constant dense<0.000000e+00> : vector<8x128xf32>
    %352 = tpu.matmul %351, %5, %cst_57 {dimension_numbers = #tpu.dot_dimension_numbers<[1], [0], [0], [1], [0, 0, 1, 1], [], []>} : vector<8x32xbf16>, vector<32x128xbf16>, vector<8x128xf32> -> vector<8x128xf32>
    %353 = arith.addf %350, %352 : vector<8x128xf32>
    %354 = vector.extract_strided_slice %353 {offsets = [0, 0], sizes = [8, 96], strides = [1, 1]} : vector<8x128xf32> to vector<8x96xf32>
    %355 = arith.negf %354 : vector<8x96xf32>
    %356 = math.exp %355 : vector<8x96xf32>
    %cst_58 = arith.constant 1.000000e+00 : f32
    %357 = vector.broadcast %cst_58 : f32 to vector<8x96xf32>
    %358 = arith.addf %357, %356 : vector<8x96xf32>
    %359 = arith.divf %357, %358 : vector<8x96xf32>
    %360 = vector.extract_strided_slice %353 {offsets = [0, 96], sizes = [8, 32], strides = [1, 1]} : vector<8x128xf32> to vector<8x32xf32>
    %361 = math.tanh %360 : vector<8x32xf32>
    %362 = vector.extract_strided_slice %359 {offsets = [0, 0], sizes = [8, 32], strides = [1, 1]} : vector<8x96xf32> to vector<8x32xf32>
    %363 = vector.extract_strided_slice %359 {offsets = [0, 32], sizes = [8, 32], strides = [1, 1]} : vector<8x96xf32> to vector<8x32xf32>
    %364 = vector.extract_strided_slice %359 {offsets = [0, 64], sizes = [8, 32], strides = [1, 1]} : vector<8x96xf32> to vector<8x32xf32>
    %365 = arith.mulf %363, %324 : vector<8x32xf32>
    %366 = arith.mulf %362, %361 : vector<8x32xf32>
    %367 = arith.addf %365, %366 : vector<8x32xf32>
    %368 = math.tanh %367 : vector<8x32xf32>
    %369 = arith.mulf %364, %368 : vector<8x32xf32>
    %370 = arith.truncf %369 : vector<8x32xf32> to vector<8x32xbf16>
    %cst_59 = arith.constant dense<0.000000e+00> : vector<8x128xf32>
    %371 = tpu.matmul %370, %8, %cst_59 {dimension_numbers = #tpu.dot_dimension_numbers<[1], [0], [0], [1], [0, 0, 1, 1], [], []>} : vector<8x32xbf16>, vector<32x128xbf16>, vector<8x128xf32> -> vector<8x128xf32>
    %372 = vector.broadcast %10 : vector<1x128xf32> to vector<8x128xf32>
    %373 = arith.addf %371, %372 : vector<8x128xf32>
    %cst_60 = arith.constant 0.000000e+00 : f32
    %374 = vector.broadcast %cst_60 : f32 to vector<8x128xf32>
    %375 = arith.maximumf %373, %374 : vector<8x128xf32>
    %376 = arith.truncf %375 : vector<8x128xf32> to vector<8x128xbf16>
    %cst_61 = arith.constant dense<0.000000e+00> : vector<8x256xf32>
    %377 = tpu.matmul %376, %14, %cst_61 {dimension_numbers = #tpu.dot_dimension_numbers<[1], [0], [0], [1], [0, 0, 1, 1], [], []>} : vector<8x128xbf16>, vector<128x256xbf16>, vector<8x256xf32> -> vector<8x256xf32>
    %378 = vector.broadcast %16 : vector<1x256xf32> to vector<8x256xf32>
    %379 = arith.addf %377, %378 : vector<8x256xf32>
    %cst_62 = arith.constant 0.000000e+00 : f32
    %380 = vector.broadcast %cst_62 : f32 to vector<8x256xf32>
    %381 = arith.maximumf %379, %380 : vector<8x256xf32>
    %382 = arith.truncf %381 : vector<8x256xf32> to vector<8x256xbf16>
    %cst_63 = arith.constant dense<0.000000e+00> : vector<8x128xf32>
    %383 = tpu.matmul %382, %11, %cst_63 {dimension_numbers = #tpu.dot_dimension_numbers<[1], [0], [0], [1], [0, 0, 1, 1], [], []>} : vector<8x256xbf16>, vector<256x128xbf16>, vector<8x128xf32> -> vector<8x128xf32>
    %384 = vector.broadcast %13 : vector<1x128xf32> to vector<8x128xf32>
    %385 = arith.addf %383, %384 : vector<8x128xf32>
    %c0_64 = arith.constant 0 : index
    %c0_65 = arith.constant 0 : index
    %386 = vector.load %arg3[%c0_64, %c0_65] : memref<8x128xf32, #tpu.memory_space<vmem>>, vector<8x128xf32>
    tpu.vector_store %arg3[%c0_64, %c0_65], %385 {strides = array<i32>} : memref<8x128xf32, #tpu.memory_space<vmem>>, vector<8x128xf32>,
    return
  }
}

</mosaic_0001>

<bundles_post_ra>
// kernel: net_forward.1
= control target key start
LH: loop header
LB: loop body
LE: loop exit
PB: predicated region body
PF: predicated region fallthrough
CT: control target
= control target key end

     0   :  { %8 = vsyncpa [#allocation3], 0  ;;  %s2671_s12 = smov [#allocation2]   ;;  %s3133_s0 = inlined_call_operand.vmem [shape: f32[64,4], index: 0, kind: input, shape index: {}]   ;;  %s3134_s1 = inlined_call_operand.hbm [shape: bf16[424,128], index: 1, kind: input, shape index: {}]   ;;  %s3135_s2 = inlined_call_operand.vmem [shape: bf16[136,256], index: 2, kind: input, shape index: {}]   ;;  %s3136_s3 = inlined_call_operand.vmem [shape: f32[8,128], index: 3, kind: output, shape index: {}]  }
   0x1   :  { %s16_s13 = sshll.u32 %s2671_s12, 4  ;;  %s17_s13 = int_to_ptr.vmem [resolvable:$true] %s16_s13 }
   0x2   :  { %s2657_s14 = scalar_lea.vmem %s17_s13, 3392  ;;  %p2662_p1 = scmp.lt.s32.totalorder %s17_s13, %s17_s13 }
   0x3   :  { %p2658_p0 = scmp.ne.s32.totalorder %s17_s13, %s2657_s14  ;;  %p2663_p2 = scmp.lt.s32.totalorder %s2657_s14, %s2657_s14 }
   0x5   :  { %p2664_p3 = por %p2663_p2, %p2662_p1 }
   0x7   :  { %p2665_p4 = pnand %p2664_p3, %p2658_p0 }
   0x9   :  { %2668 = shalt.err (!%p2665_p4)
}
   0xa   :  { %s2672_s15 = smov 64   ;;  %s2673_s16 = smov 4  }
   0xb   :  { %22 = dma.hbm_to_vmem [thread:$0]  %s3134_s1, 3392, %s17_s13, [#allocation3], %s2672_s15, %s2672_s15, %s2673_s16  }
   0xc   :  { %2669 = dma.done.wait [#allocation3], 3392  }
   0xd   :  { %2670 = vsyncadd [#allocation3], 4294963904  ;;  %v2674_v0 = vmov 0.0   ;;  %vm2675_vm0 = vmmov 0   ;;  %vm134_vm1 = vcmask 1041408   ;;  %v2706_v3 = vld [vmem:[#allocation2 + $0xc] sm:$0xff]   ;;  %v117_v12 = vlaneseq }
   0xe   :  { %2259 = vmatprep.subr.bf16.mxu1 %v2674_v0  ;;  %2263 = vmatprep.mubr.msk.bf16.mxu1 %vm2675_vm0, %v2674_v0  ;;  %v29_v1 = vld [vmem:[#allocation2] sm:$0x3]  ;;  %v106_v5 = vld [vmem:[%s3133_s0 + $0x8] sm:$0xff]  ;;  %vm121_vm2 = vcmask 31744   ;;  %v107_v7 = vld [vmem:[%s3133_s0 + $0x10] sm:$0xff]  ;;  %v2676_v11 = vmov 0  }
   0xf   :  { %2459 = vmatprep.subr.msk.bf16.mxu0 %vm134_vm1, %v29_v1  ;;  %v136_v2 = vsel %vm134_vm1, %v29_v1, 0  ;;  %v105_v4 = vld [vmem:[%s3133_s0] sm:$0xff]  ;;  %v108_v8 = vld [vmem:[%s3133_s0 + $0x18] sm:$0xff]  ;;  %2260 = vmatpush3.bf16.msra.mxu1 %v2706_v3  ;;  %v118_v13 = vshrl.u32 %v117_v12, 7  ;;  %v34_v14 = vld [vmem:[#allocation2 + $0x14] sm:$0x1] }
  0x10   :  { %2250 = vmatpush3.bf16.msra.mxu0 %v136_v2  ;;  %v113_v6 = vpack.c.bf16 %v106_v5, %v105_v4  ;;  %v114_v9 = vpack.c.bf16 %v108_v8, %v107_v7  ;;  %v2721_v10 = vld [vmem:[#allocation2 + $0x4] sm:$0xff]   ;;  %2261 = vmatprep.subr.bf16.mxu1 %v2674_v0  ;;  %v35_v15 = vunpack.c.l.bf16 %v34_v14  ;;  %s2677_s26 = smov 32   ;;  %v111_v40 = vld [vmem:[%s3133_s0 + $0x30] sm:$0xff]  ;;  %v112_v41 = vld [vmem:[%s3133_s0 + $0x38] sm:$0xff]  ;;  %vm215_vm3 = vcmask 261120  }
  0x11   :  { %2275 = vmatprep.subr.bf16.mxu0 %v2674_v0  ;;  %v2732_v16 = vsub.s32 0, %v118_v13  ;;  %v2745_v36 = vld [vmem:[#allocation2 + $0x20] sm:$0xff]   ;;  %v110_v38 = vld [vmem:[%s3133_s0 + $0x28] sm:$0xff]  ;;  %v2759_v42 = vld [vmem:[#allocation2 + $0x30] sm:$0xff]   ;;  %v116_v43 = vpack.c.bf16 %v112_v41, %v111_v40 }
  0x12   :  { %2251 = vmatprep.mubr.msk.bf16.mxu0 %vm121_vm2, %v113_v6  ;;  %v109_v37 = vld [vmem:[%s3133_s0 + $0x20] sm:$0xff]  ;;  %v2762_v44 = vld [vmem:[#allocation2 + $0x18] sm:$0xff]   ;;  %v2768_v45 = vld [vmem:[#allocation2 + $0x28] sm:$0xff]  }
  0x13   :  { %2252 = vmatmul.mubr.msk.bf16.vlgmr.msra.gmra.mxu0 %vm121_vm2, %v114_v9  ;;  %2262 = vmatpush3.bf16.msra.mxu1 %v2721_v10  ;;  %v2737_v18 = vrot.slane %v35_v15, %v2732_v16  ;;  %v115_v39 = vpack.c.bf16 %v110_v38, %v109_v37  ;;  %v44_v61 = vld [vmem:[#allocation2 + $0x38] sm:$0x1] }
  0x14   :  { %2267 = vmatprep.subr.bf16.mxu1 %v2674_v0  ;;  %2276 = vmatpush3.bf16.msra.mxu0 %v2759_v42  ;;  %v45_v62 = vunpack.c.l.bf16 %v44_v61 }
  0x15   :  { %2255 = vmatprep.mubr.msk.bf16.mxu0 %vm121_vm2, %v115_v39  ;;  %2277 = vmatprep.subr.bf16.mxu0 %v2674_v0 }
  0x16   :  { %2264 = vmatmul.mubr.bf16.vlgmr.msra.gmra.mxu1 %v2676_v11  ;;  %v2811_v63 = vrot.slane %v45_v62, %v2732_v16 }
  0x17   :  { %2271 = vmatprep.mubr.msk.bf16.mxu1 %vm2675_vm0, %v2674_v0  ;;  %2268 = vmatpush3.bf16.msra.mxu1 %v2745_v36 }
  0x18   :  { %2269 = vmatprep.subr.bf16.mxu1 %v2674_v0  ;;  %2278 = vmatpush3.bf16.msra.mxu0 %v2768_v45 }
  0x19   :  { %2291 = vmatprep.subr.bf16.mxu0 %v2674_v0 }
  0x1b   :  { %2256 = vmatmul.mubr.msk.bf16.gmra.mxu0 %vm121_vm2, %v116_v43  ;;  %2270 = vmatpush3.bf16.msra.mxu1 %v2762_v44 }
  0x1c   :  { %2279 = vmatprep.mubr.msk.bf16.mxu0 %vm2675_vm0, %v2674_v0  ;;  %2283 = vmatprep.subr.bf16.mxu1 %v2674_v0 }
  0x23   :  { %2280 = vmatmul.mubr.bf16.vlgmr.msra.gmra.mxu0 %v2676_v11 }
  0x24   :  { %2292 = vmatpush3.bf16.msra.mxu0 %v2745_v36  ;;  %2295 = vmatprep.mubr.msk.bf16.mxu0 %vm2675_vm0, %v2674_v0 }
  0x25   :  { %2293 = vmatprep.subr.bf16.mxu0 %v2674_v0 }
  0x28   :  { %2294 = vmatpush3.bf16.msra.mxu0 %v2762_v44 }
  0x29   :  { %2307 = vmatprep.subr.bf16.mxu0 %v2674_v0 }
  0xd3   :  { %v2734_v17 = vpop.f32.mrf.mxu0 }
  0xd5   :  { %v172_v19 = vpop.f32.mrf.mxu0 }
  0xd6   :  { %v173_v20 = vadd.f32 %v172_v19, %v2737_v18  ;;  %v253_v21 = vpop.f32.mrf.mxu1 }
  0xd7   :  { %v2800_v51 = vpop.f32.mrf.mxu0 }
  0xd8   :  { %v259_v22 = vadd.f32 %v253_v21, %v173_v20  ;;  %v2265_v23 = vpop.f32.mrf.mxu1 }
  0xd9   :  { %v175_v52 = vpop.f32.mrf.mxu0 }
  0xda   :  { %2515 = vtanh.f32 %v259_v22  ;;  %v256_v24 = vpop.f32.mrf.mxu1  ;;  %v2070_v27 = vmul.f32 -1.442695, %v259_v22  ;;  %v176_v8 = vadd.f32 %v175_v52, %v2737_v18 }
  0xdb   :  { %v2802_v53 = vpop.f32.mrf.mxu0 }
  0xdc   :  { %v2266_v25 = vpop.f32.mrf.mxu1  ;;  %2517 = vpow2.f32 %v2070_v27 }
  0xdd   :  { %v2804_v54 = vpop.f32.mrf.mxu0 }
  0xdf   :  { %v2806_v55 = vpop.f32.mrf.mxu0 }
  0xe1   :  { %v2808_v56 = vpop.f32.mrf.mxu0 }
  0xe3   :  { %v394_v57 = vpop.f32.mrf.mxu0 }
  0xe5   :  { %v2281_v58 = vpop.f32.mrf.mxu0 }
  0xe7   :  { %v2516_v26 = vpop.eup %2515  ;;  %v397_v59 = vpop.f32.mrf.mxu0 }
  0xe8   :  { %269 = vrot.lane.b32.xlu0 %v2516_v26, %s2677_s26 }
  0xe9   :  { %v2518_v28 = vpop.eup %2517  ;;  %v2282_v60 = vpop.f32.mrf.mxu0 }
  0xea   :  { %v263_v29 = vadd.f32 1.0, %v2518_v28 }
  0xec   :  { %2519 = vrcp.f32 %v263_v29 }
  0xf9   :  { %v2520_v30 = vpop.eup %2519 }
  0xfa   :  { %v267_v33 = vmul.f32 0.0, %v2520_v30 }
 0x15a   :  { %v270_v31 = vpop.permute.xlu0 %269 }
 0x15b   :  { %v272_v32 = vmul.f32 %v2520_v30, %v270_v31 }
 0x15d   :  { %274 = vrot.lane.b32.xlu0 %v272_v32, %s2677_s26 }
 0x1cf   :  { %v275_v34 = vpop.permute.xlu0 %274 }
 0x1d0   :  { %v2742_v35 = vadd.f32 %v275_v34, %v267_v33 }
 0x1d2   :  { %2521 = vtanh.f32 %v2742_v35 }
 0x1df   :  { %v2522_v46 = vpop.eup %2521 }
 0x1e0   :  { %280 = vrot.lane.b32.xlu1 %v2522_v46, %s2677_s26 }
 0x252   :  { %v281_v47 = vpop.permute.xlu1 %280 }
 0x253   :  { %v283_v48 = vmul.f32 %v2520_v30, %v281_v47 }
 0x255   :  { %v284_v49 = vpack.c.bf16 %v283_v48, %v283_v48 }
 0x257   :  { %286 = vrot.lane.b32.xlu1 %v284_v49, %s2672_s15 }
 0x2c9   :  { %v287_v50 = vpop.permute.xlu1 %286 }
 0x2ca   :  { %2272 = vmatmul.mubr.msk.bf16.vlgmr.msra.gmra.mxu1 %vm215_vm3, %v287_v50 }
 0x2cb   :  { %2284 = vmatpush3.bf16.msra.mxu1 %v2706_v3  ;;  %2287 = vmatprep.mubr.msk.bf16.mxu1 %vm2675_vm0, %v2674_v0 }
 0x2cc   :  { %2285 = vmatprep.subr.bf16.mxu1 %v2674_v0 }
 0x2cf   :  { %2286 = vmatpush3.bf16.msra.mxu1 %v2721_v10 }
 0x2d0   :  { %2299 = vmatprep.subr.bf16.mxu1 %v2674_v0 }
 0x2d2   :  { %2288 = vmatmul.mubr.msk.bf16.vlgmr.msra.gmra.mxu1 %vm215_vm3, %v287_v50 }
 0x2d3   :  { %2300 = vmatpush3.bf16.msra.mxu1 %v2759_v42  ;;  %2303 = vmatprep.mubr.msk.bf16.mxu1 %vm2675_vm0, %v2674_v0 }
 0x2d4   :  { %2301 = vmatprep.subr.bf16.mxu1 %v2674_v0 }
 0x2d7   :  { %2302 = vmatpush3.bf16.msra.mxu1 %v2768_v45 }
 0x2d8   :  { %2315 = vmatprep.subr.bf16.mxu1 %v2674_v0 }
 0x38a   :  { %v337_v1 = vpop.f32.mrf.mxu1 }
 0x38b   :  { %v347_v2 = vadd.f32 %v2811_v63, %v337_v1 }
 0x38c   :  { %v2273_v4 = vpop.f32.mrf.mxu1 }
 0x38d   :  { %v400_v5 = vadd.f32 %v394_v57, %v347_v2 }
 0x38e   :  { %v340_v6 = vpop.f32.mrf.mxu1 }
 0x38f   :  { %2523 = vtanh.f32 %v400_v5  ;;  %v2076_v21 = vmul.f32 -1.442695, %v400_v5 }
 0x390   :  { %v2274_v7 = vpop.f32.mrf.mxu1 }
 0x391   :  { %v181_v7 = vadd.f32 %v2734_v17, %v2737_v18 }
 0x392   :  { %v459_v9 = vpop.f32.mrf.mxu1 }
 0x393   :  { %v465_v12 = vadd.f32 %v459_v9, %v176_v8 }
 0x394   :  { %v2289_v13 = vpop.f32.mrf.mxu1 }
 0x395   :  { %2525 = vtanh.f32 %v465_v12  ;;  %v2078_v22 = vmul.f32 -1.442695, %v465_v12 }
 0x396   :  { %v462_v14 = vpop.f32.mrf.mxu1  ;;  %2527 = vpow2.f32 %v2076_v21 }
 0x397   :  { %2529 = vpow2.f32 %v2078_v22 }
 0x398   :  { %v2290_v15 = vpop.f32.mrf.mxu1 }
 0x39c   :  { %v2524_v19 = vpop.eup %2523 }
 0x39d   :  { %410 = vrot.lane.b32.xlu1 %v2524_v19, %s2677_s26 }
 0x3a2   :  { %v2526_v20 = vpop.eup %2525 }
 0x3a3   :  { %475 = vrot.lane.b32.xlu0 %v2526_v20, %s2677_s26  ;;  %v2528_v23 = vpop.eup %2527 }
 0x3a4   :  { %v404_v24 = vadd.f32 1.0, %v2528_v23  ;;  %v2530_v25 = vpop.eup %2529 }
 0x3a5   :  { %v469_v26 = vadd.f32 1.0, %v2530_v25 }
 0x3a6   :  { %2531 = vrcp.f32 %v404_v24 }
 0x3a7   :  { %2533 = vrcp.f32 %v469_v26 }
 0x3b3   :  { %v2532_v27 = vpop.eup %2531 }
 0x3b4   :  { %v2534_v30 = vpop.eup %2533  ;;  %v408_v33 = vmul.f32 0.0, %v2532_v27 }
 0x3b5   :  { %v473_v38 = vmul.f32 %v2534_v30, %v2742_v35 }
 0x40f   :  { %v411_v28 = vpop.permute.xlu1 %410 }
 0x410   :  { %v413_v29 = vmul.f32 %v2532_v27, %v411_v28 }
 0x412   :  { %415 = vrot.lane.b32.xlu1 %v413_v29, %s2677_s26 }
 0x415   :  { %v476_v31 = vpop.permute.xlu0 %475 }
 0x416   :  { %v478_v32 = vmul.f32 %v2534_v30, %v476_v31 }
 0x418   :  { %480 = vrot.lane.b32.xlu0 %v478_v32, %s2677_s26 }
 0x484   :  { %v416_v34 = vpop.permute.xlu1 %415 }
 0x485   :  { %v2819_v37 = vadd.f32 %v416_v34, %v408_v33 }
 0x487   :  { %2535 = vtanh.f32 %v2819_v37 }
 0x48a   :  { %v481_v39 = vpop.permute.xlu0 %480 }
 0x48b   :  { %v2823_v40 = vadd.f32 %v481_v39, %v473_v38 }
 0x48d   :  { %2537 = vtanh.f32 %v2823_v40 }
 0x494   :  { %v2536_v41 = vpop.eup %2535 }
 0x495   :  { %421 = vrot.lane.b32.xlu1 %v2536_v41, %s2677_s26 }
 0x49a   :  { %v2538_v43 = vpop.eup %2537 }
 0x49b   :  { %486 = vrot.lane.b32.xlu0 %v2538_v43, %s2677_s26 }
 0x507   :  { %v422_v46 = vpop.permute.xlu1 %421 }
 0x508   :  { %v424_v47 = vmul.f32 %v2532_v27, %v422_v46 }
 0x50a   :  { %v538_v48 = vpack.c.bf16 %v424_v47, %v424_v47 }
 0x50c   :  { %540 = vrot.lane.b32.xlu1 %v538_v48, %s2672_s15 }
 0x50d   :  { %v487_v49 = vpop.permute.xlu0 %486 }
 0x50e   :  { %v489_v50 = vmul.f32 %v2534_v30, %v487_v49 }
 0x510   :  { %v490_v52 = vpack.c.bf16 %v489_v50, %v489_v50 }
 0x512   :  { %492 = vrot.lane.b32.xlu0 %v490_v52, %s2672_s15 }
 0x57e   :  { %v541_v35 = vpop.permute.xlu1 %540 }
 0x57f   :  { %2304 = vmatmul.mubr.msk.bf16.vlgmr.msra.gmra.mxu1 %vm215_vm3, %v541_v35 }
 0x580   :  { %2316 = vmatpush3.bf16.msra.mxu1 %v2745_v36  ;;  %2319 = vmatprep.mubr.msk.bf16.mxu1 %vm2675_vm0, %v2674_v0 }
 0x581   :  { %2317 = vmatprep.subr.bf16.mxu1 %v2674_v0 }
 0x584   :  { %v493_v57 = vpop.permute.xlu0 %492  ;;  %2318 = vmatpush3.bf16.msra.mxu1 %v2762_v44 }
 0x585   :  { %2296 = vmatmul.mubr.msk.bf16.vlgmr.msra.gmra.mxu0 %vm215_vm3, %v493_v57  ;;  %2331 = vmatprep.subr.bf16.mxu1 %v2674_v0 }
 0x586   :  { %2308 = vmatpush3.bf16.msra.mxu0 %v2706_v3  ;;  %2311 = vmatprep.mubr.msk.bf16.mxu0 %vm2675_vm0, %v2674_v0 }
 0x587   :  { %2309 = vmatprep.subr.bf16.mxu0 %v2674_v0 }
 0x58a   :  { %2310 = vmatpush3.bf16.msra.mxu0 %v2721_v10 }
 0x58b   :  { %2323 = vmatprep.subr.bf16.mxu0 %v2674_v0 }
 0x58d   :  { %2312 = vmatmul.mubr.msk.bf16.vlgmr.msra.gmra.mxu0 %vm215_vm3, %v493_v57 }
 0x58e   :  { %2324 = vmatpush3.bf16.msra.mxu0 %v2759_v42  ;;  %2327 = vmatprep.mubr.msk.bf16.mxu0 %vm2675_vm0, %v2674_v0 }
 0x58f   :  { %2325 = vmatprep.subr.bf16.mxu0 %v2674_v0 }
 0x592   :  { %2326 = vmatpush3.bf16.msra.mxu0 %v2768_v45 }
 0x593   :  { %2339 = vmatprep.subr.bf16.mxu0 %v2674_v0 }
 0x63f   :  { %v579_v58 = vpop.f32.mrf.mxu1 }
 0x641   :  { %v2305_v59 = vpop.f32.mrf.mxu1 }
 0x643   :  { %v582_v60 = vpop.f32.mrf.mxu1 }
 0x645   :  { %v531_v61 = vpop.f32.mrf.mxu0  ;;  %v2306_v62 = vpop.f32.mrf.mxu1 }
 0x646   :  { %v537_v1 = vadd.f32 %v531_v61, %v2811_v63 }
 0x647   :  { %v2297_v2 = vpop.f32.mrf.mxu0 }
 0x648   :  { %v585_v4 = vadd.f32 %v579_v58, %v537_v1 }
 0x649   :  { %v534_v5 = vpop.f32.mrf.mxu0 }
 0x64a   :  { %2539 = vtanh.f32 %v585_v4  ;;  %v2081_v20 = vmul.f32 -1.442695, %v585_v4  ;;  %v184_v5 = vadd.f32 %v2800_v51, %v2737_v18 }
 0x64b   :  { %v2298_v6 = vpop.f32.mrf.mxu0 }
 0x64d   :  { %v644_v8 = vpop.f32.mrf.mxu0 }
 0x64e   :  { %v650_v9 = vadd.f32 %v644_v8, %v181_v7 }
 0x64f   :  { %v2313_v12 = vpop.f32.mrf.mxu0 }
 0x650   :  { %2541 = vtanh.f32 %v650_v9  ;;  %v2083_v21 = vmul.f32 -1.442695, %v650_v9 }
 0x651   :  { %v647_v13 = vpop.f32.mrf.mxu0  ;;  %2543 = vpow2.f32 %v2081_v20 }
 0x652   :  { %2545 = vpow2.f32 %v2083_v21 }
 0x653   :  { %v2314_v14 = vpop.f32.mrf.mxu0 }
 0x657   :  { %v2540_v15 = vpop.eup %2539 }
 0x658   :  { %595 = vrot.lane.b32.xlu1 %v2540_v15, %s2677_s26 }
 0x65d   :  { %v2542_v19 = vpop.eup %2541 }
 0x65e   :  { %660 = vrot.lane.b32.xlu0 %v2542_v19, %s2677_s26  ;;  %v2544_v22 = vpop.eup %2543 }
 0x65f   :  { %v589_v23 = vadd.f32 1.0, %v2544_v22  ;;  %v2546_v24 = vpop.eup %2545 }
 0x660   :  { %v654_v17 = vadd.f32 1.0, %v2546_v24 }
 0x661   :  { %2547 = vrcp.f32 %v589_v23 }
 0x662   :  { %2549 = vrcp.f32 %v654_v17 }
 0x66e   :  { %v2548_v25 = vpop.eup %2547 }
 0x66f   :  { %v2550_v28 = vpop.eup %2549  ;;  %v593_v31 = vmul.f32 %v2548_v25, %v2819_v37 }
 0x670   :  { %v658_v34 = vmul.f32 %v2550_v28, %v2823_v40 }
 0x6ca   :  { %v596_v26 = vpop.permute.xlu1 %595 }
 0x6cb   :  { %v598_v27 = vmul.f32 %v2548_v25, %v596_v26 }
 0x6cd   :  { %600 = vrot.lane.b32.xlu1 %v598_v27, %s2677_s26 }
 0x6d0   :  { %v661_v29 = vpop.permute.xlu0 %660 }
 0x6d1   :  { %v663_v30 = vmul.f32 %v2550_v28, %v661_v29 }
 0x6d3   :  { %665 = vrot.lane.b32.xlu0 %v663_v30, %s2677_s26 }
 0x73f   :  { %v601_v32 = vpop.permute.xlu1 %600 }
 0x740   :  { %v2859_v33 = vadd.f32 %v601_v32, %v593_v31 }
 0x742   :  { %2551 = vtanh.f32 %v2859_v33 }
 0x745   :  { %v666_v38 = vpop.permute.xlu0 %665 }
 0x746   :  { %v2863_v39 = vadd.f32 %v666_v38, %v658_v34 }
 0x748   :  { %2553 = vtanh.f32 %v2863_v39 }
 0x74f   :  { %v2552_v41 = vpop.eup %2551 }
 0x750   :  { %606 = vrot.lane.b32.xlu1 %v2552_v41, %s2677_s26 }
 0x755   :  { %v2554_v43 = vpop.eup %2553 }
 0x756   :  { %671 = vrot.lane.b32.xlu0 %v2554_v43, %s2677_s26 }
 0x7c2   :  { %v607_v46 = vpop.permute.xlu1 %606 }
 0x7c3   :  { %v609_v37 = vmul.f32 %v2548_v25, %v607_v46 }
 0x7c5   :  { %v723_v47 = vpack.c.bf16 %v609_v37, %v609_v37 }
 0x7c7   :  { %725 = vrot.lane.b32.xlu1 %v723_v47, %s2672_s15 }
 0x7c8   :  { %v672_v48 = vpop.permute.xlu0 %671 }
 0x7c9   :  { %v674_v49 = vmul.f32 %v2550_v28, %v672_v48 }
 0x7cb   :  { %v675_v50 = vpack.c.bf16 %v674_v49, %v674_v49 }
 0x7cd   :  { %677 = vrot.lane.b32.xlu0 %v675_v50, %s2672_s15 }
 0x839   :  { %v726_v40 = vpop.permute.xlu1 %725 }
 0x83a   :  { %2328 = vmatmul.mubr.msk.bf16.vlgmr.msra.gmra.mxu0 %vm215_vm3, %v726_v40 }
 0x83b   :  { %2340 = vmatpush3.bf16.msra.mxu0 %v2745_v36  ;;  %2343 = vmatprep.mubr.msk.bf16.mxu0 %vm2675_vm0, %v2674_v0 }
 0x83c   :  { %2341 = vmatprep.subr.bf16.mxu0 %v2674_v0 }
 0x83f   :  { %v678_v52 = vpop.permute.xlu0 %677  ;;  %2342 = vmatpush3.bf16.msra.mxu0 %v2762_v44 }
 0x840   :  { %2320 = vmatmul.mubr.msk.bf16.vlgmr.msra.gmra.mxu1 %vm215_vm3, %v678_v52  ;;  %2355 = vmatprep.subr.bf16.mxu0 %v2674_v0 }
 0x841   :  { %2332 = vmatpush3.bf16.msra.mxu1 %v2706_v3  ;;  %2335 = vmatprep.mubr.msk.bf16.mxu1 %vm2675_vm0, %v2674_v0 }
 0x842   :  { %2333 = vmatprep.subr.bf16.mxu1 %v2674_v0 }
 0x845   :  { %2334 = vmatpush3.bf16.msra.mxu1 %v2721_v10 }
 0x846   :  { %2347 = vmatprep.subr.bf16.mxu1 %v2674_v0 }
 0x848   :  { %2336 = vmatmul.mubr.msk.bf16.vlgmr.msra.gmra.mxu1 %vm215_vm3, %v678_v52 }
 0x849   :  { %2348 = vmatpush3.bf16.msra.mxu1 %v2759_v42  ;;  %2351 = vmatprep.mubr.msk.bf16.mxu1 %vm2675_vm0, %v2674_v0 }
 0x84a   :  { %2349 = vmatprep.subr.bf16.mxu1 %v2674_v0 }
 0x84d   :  { %2350 = vmatpush3.bf16.msra.mxu1 %v2768_v45 }
 0x84e   :  { %2363 = vmatprep.subr.bf16.mxu1 %v2674_v0 }
 0x8fa   :  { %v764_v35 = vpop.f32.mrf.mxu0 }
 0x8fc   :  { %v2329_v57 = vpop.f32.mrf.mxu0 }
 0x8fe   :  { %v767_v58 = vpop.f32.mrf.mxu0 }
 0x900   :  { %v716_v59 = vpop.f32.mrf.mxu1  ;;  %v2330_v60 = vpop.f32.mrf.mxu0 }
 0x901   :  { %v722_v61 = vadd.f32 %v716_v59, %v2811_v63 }
 0x902   :  { %v2321_v62 = vpop.f32.mrf.mxu1 }
 0x903   :  { %v770_v1 = vadd.f32 %v764_v35, %v722_v61 }
 0x904   :  { %v719_v2 = vpop.f32.mrf.mxu1 }
 0x905   :  { %2555 = vtanh.f32 %v770_v1  ;;  %v2086_v15 = vmul.f32 -1.442695, %v770_v1  ;;  %v189_v1 = vadd.f32 %v2804_v54, %v2737_v18 }
 0x906   :  { %v2322_v4 = vpop.f32.mrf.mxu1 }
 0x908   :  { %v829_v6 = vpop.f32.mrf.mxu1 }
 0x909   :  { %v835_v7 = vadd.f32 %v829_v6, %v184_v5 }
 0x90a   :  { %v2337_v8 = vpop.f32.mrf.mxu1 }
 0x90b   :  { %2557 = vtanh.f32 %v835_v7  ;;  %v2088_v19 = vmul.f32 -1.442695, %v835_v7 }
 0x90c   :  { %v832_v9 = vpop.f32.mrf.mxu1  ;;  %2559 = vpow2.f32 %v2086_v15 }
 0x90d   :  { %2561 = vpow2.f32 %v2088_v19 }
 0x90e   :  { %v2338_v12 = vpop.f32.mrf.mxu1 }
 0x912   :  { %v2556_v13 = vpop.eup %2555 }
 0x913   :  { %780 = vrot.lane.b32.xlu1 %v2556_v13, %s2677_s26 }
 0x918   :  { %v2558_v14 = vpop.eup %2557 }
 0x919   :  { %845 = vrot.lane.b32.xlu0 %v2558_v14, %s2677_s26  ;;  %v2560_v20 = vpop.eup %2559 }
 0x91a   :  { %v774_v21 = vadd.f32 1.0, %v2560_v20  ;;  %v2562_v22 = vpop.eup %2561 }
 0x91b   :  { %v839_v51 = vadd.f32 1.0, %v2562_v22 }
 0x91c   :  { %2563 = vrcp.f32 %v774_v21 }
 0x91d   :  { %2565 = vrcp.f32 %v839_v51 }
 0x929   :  { %v2564_v23 = vpop.eup %2563 }
 0x92a   :  { %v2566_v25 = vpop.eup %2565  ;;  %v778_v28 = vmul.f32 %v2564_v23, %v2859_v33 }
 0x92b   :  { %v843_v31 = vmul.f32 %v2566_v25, %v2863_v39 }
 0x985   :  { %v781_v24 = vpop.permute.xlu1 %780 }
 0x986   :  { %v783_v17 = vmul.f32 %v2564_v23, %v781_v24 }
 0x988   :  { %785 = vrot.lane.b32.xlu1 %v783_v17, %s2677_s26 }
 0x98b   :  { %v846_v26 = vpop.permute.xlu0 %845 }
 0x98c   :  { %v848_v27 = vmul.f32 %v2566_v25, %v846_v26 }
 0x98e   :  { %850 = vrot.lane.b32.xlu0 %v848_v27, %s2677_s26 }
 0x9fa   :  { %v786_v29 = vpop.permute.xlu1 %785 }
 0x9fb   :  { %v2899_v30 = vadd.f32 %v786_v29, %v778_v28 }
 0x9fd   :  { %2567 = vtanh.f32 %v2899_v30 }
 0xa00   :  { %v851_v32 = vpop.permute.xlu0 %850 }
 0xa01   :  { %v2903_v34 = vadd.f32 %v851_v32, %v843_v31 }
 0xa03   :  { %2569 = vtanh.f32 %v2903_v34 }
 0xa0a   :  { %v2568_v38 = vpop.eup %2567 }
 0xa0b   :  { %791 = vrot.lane.b32.xlu1 %v2568_v38, %s2677_s26 }
 0xa10   :  { %v2570_v41 = vpop.eup %2569 }
 0xa11   :  { %856 = vrot.lane.b32.xlu0 %v2570_v41, %s2677_s26 }
 0xa7d   :  { %v792_v43 = vpop.permute.xlu1 %791 }
 0xa7e   :  { %v794_v33 = vmul.f32 %v2564_v23, %v792_v43 }
 0xa80   :  { %v908_v46 = vpack.c.bf16 %v794_v33, %v794_v33 }
 0xa82   :  { %910 = vrot.lane.b32.xlu1 %v908_v46, %s2672_s15 }
 0xa83   :  { %v857_v37 = vpop.permute.xlu0 %856 }
 0xa84   :  { %v859_v47 = vmul.f32 %v2566_v25, %v857_v37 }
 0xa86   :  { %v860_v48 = vpack.c.bf16 %v859_v47, %v859_v47 }
 0xa88   :  { %862 = vrot.lane.b32.xlu0 %v860_v48, %s2672_s15 }
 0xaf4   :  { %v911_v39 = vpop.permute.xlu1 %910 }
 0xaf5   :  { %2352 = vmatmul.mubr.msk.bf16.vlgmr.msra.gmra.mxu1 %vm215_vm3, %v911_v39 }
 0xaf6   :  { %2364 = vmatpush3.bf16.msra.mxu1 %v2745_v36  ;;  %2367 = vmatprep.mubr.msk.bf16.mxu1 %vm2675_vm0, %v2674_v0 }
 0xaf7   :  { %2365 = vmatprep.subr.bf16.mxu1 %v2674_v0 }
 0xafa   :  { %v863_v49 = vpop.permute.xlu0 %862  ;;  %2366 = vmatpush3.bf16.msra.mxu1 %v2762_v44 }
 0xafb   :  { %2344 = vmatmul.mubr.msk.bf16.vlgmr.msra.gmra.mxu0 %vm215_vm3, %v863_v49  ;;  %2379 = vmatprep.subr.bf16.mxu1 %v2674_v0 }
 0xafc   :  { %2356 = vmatpush3.bf16.msra.mxu0 %v2706_v3  ;;  %2359 = vmatprep.mubr.msk.bf16.mxu0 %vm2675_vm0, %v2674_v0 }
 0xafd   :  { %2357 = vmatprep.subr.bf16.mxu0 %v2674_v0 }
 0xb00   :  { %2358 = vmatpush3.bf16.msra.mxu0 %v2721_v10 }
 0xb01   :  { %2371 = vmatprep.subr.bf16.mxu0 %v2674_v0 }
 0xb03   :  { %2360 = vmatmul.mubr.msk.bf16.vlgmr.msra.gmra.mxu0 %vm215_vm3, %v863_v49 }
 0xb04   :  { %2372 = vmatpush3.bf16.msra.mxu0 %v2759_v42  ;;  %2375 = vmatprep.mubr.msk.bf16.mxu0 %vm2675_vm0, %v2674_v0 }
 0xb05   :  { %2373 = vmatprep.subr.bf16.mxu0 %v2674_v0 }
 0xb08   :  { %2374 = vmatpush3.bf16.msra.mxu0 %v2768_v45 }
 0xb09   :  { %2387 = vmatprep.subr.bf16.mxu0 %v2674_v0 }
 0xbb5   :  { %v949_v50 = vpop.f32.mrf.mxu1 }
 0xbb7   :  { %v2353_v40 = vpop.f32.mrf.mxu1 }
 0xbb9   :  { %v952_v52 = vpop.f32.mrf.mxu1 }
 0xbbb   :  { %v901_v35 = vpop.f32.mrf.mxu0  ;;  %v2354_v57 = vpop.f32.mrf.mxu1 }
 0xbbc   :  { %v907_v58 = vadd.f32 %v901_v35, %v2811_v63  ;;  %v192_v57 = vadd.f32 %v2808_v56, %v2737_v18 }
 0xbbd   :  { %v2345_v59 = vpop.f32.mrf.mxu0 }
 0xbbe   :  { %v955_v60 = vadd.f32 %v949_v50, %v907_v58 }
 0xbbf   :  { %v904_v61 = vpop.f32.mrf.mxu0 }
 0xbc0   :  { %2571 = vtanh.f32 %v955_v60  ;;  %v2091_v12 = vmul.f32 -1.442695, %v955_v60 }
 0xbc1   :  { %v2346_v62 = vpop.f32.mrf.mxu0 }
 0xbc3   :  { %v1014_v2 = vpop.f32.mrf.mxu0 }
 0xbc4   :  { %v1020_v4 = vadd.f32 %v1014_v2, %v189_v1 }
 0xbc5   :  { %v2361_v5 = vpop.f32.mrf.mxu0 }
 0xbc6   :  { %2573 = vtanh.f32 %v1020_v4  ;;  %v2093_v13 = vmul.f32 -1.442695, %v1020_v4 }
 0xbc7   :  { %v1017_v6 = vpop.f32.mrf.mxu0  ;;  %2575 = vpow2.f32 %v2091_v12 }
 0xbc8   :  { %2577 = vpow2.f32 %v2093_v13 }
 0xbc9   :  { %v2362_v7 = vpop.f32.mrf.mxu0 }
 0xbcd   :  { %v2572_v8 = vpop.eup %2571 }
 0xbce   :  { %965 = vrot.lane.b32.xlu1 %v2572_v8, %s2677_s26 }
 0xbd3   :  { %v2574_v9 = vpop.eup %2573 }
 0xbd4   :  { %1030 = vrot.lane.b32.xlu0 %v2574_v9, %s2677_s26  ;;  %v2576_v14 = vpop.eup %2575 }
 0xbd5   :  { %v959_v15 = vadd.f32 1.0, %v2576_v14  ;;  %v2578_v19 = vpop.eup %2577 }
 0xbd6   :  { %v1024_v54 = vadd.f32 1.0, %v2578_v19 }
 0xbd7   :  { %2579 = vrcp.f32 %v959_v15 }
 0xbd8   :  { %2581 = vrcp.f32 %v1024_v54 }
 0xbe4   :  { %v2580_v20 = vpop.eup %2579 }
 0xbe5   :  { %v2582_v51 = vpop.eup %2581  ;;  %v963_v17 = vmul.f32 %v2580_v20, %v2899_v30 }
 0xbe6   :  { %v1028_v27 = vmul.f32 %v2582_v51, %v2903_v34 }
 0xc40   :  { %v966_v21 = vpop.permute.xlu1 %965 }
 0xc41   :  { %v968_v22 = vmul.f32 %v2580_v20, %v966_v21 }
 0xc43   :  { %970 = vrot.lane.b32.xlu1 %v968_v22, %s2677_s26 }
 0xc46   :  { %v1031_v23 = vpop.permute.xlu0 %1030 }
 0xc47   :  { %v1033_v24 = vmul.f32 %v2582_v51, %v1031_v23 }
 0xc49   :  { %1035 = vrot.lane.b32.xlu0 %v1033_v24, %s2677_s26 }
 0xcb5   :  { %v971_v25 = vpop.permute.xlu1 %970 }
 0xcb6   :  { %v2939_v26 = vadd.f32 %v971_v25, %v963_v17 }
 0xcb8   :  { %2583 = vtanh.f32 %v2939_v26 }
 0xcbb   :  { %v1036_v28 = vpop.permute.xlu0 %1035 }
 0xcbc   :  { %v2943_v29 = vadd.f32 %v1036_v28, %v1028_v27 }
 0xcbe   :  { %2585 = vtanh.f32 %v2943_v29 }
 0xcc5   :  { %v2584_v31 = vpop.eup %2583 }
 0xcc6   :  { %976 = vrot.lane.b32.xlu1 %v2584_v31, %s2677_s26 }
 0xccb   :  { %v2586_v32 = vpop.eup %2585 }
 0xccc   :  { %1041 = vrot.lane.b32.xlu0 %v2586_v32, %s2677_s26 }
 0xd38   :  { %v977_v38 = vpop.permute.xlu1 %976 }
 0xd39   :  { %v979_v30 = vmul.f32 %v2580_v20, %v977_v38 }
 0xd3b   :  { %v1093_v41 = vpack.c.bf16 %v979_v30, %v979_v30  ;;  %v2998_v30 = vld [vmem:[#allocation2 + $0xc] sm:$0xff]  }
 0xd3d   :  { %1095 = vrot.lane.b32.xlu1 %v1093_v41, %s2672_s15 }
 0xd3e   :  { %v1042_v43 = vpop.permute.xlu0 %1041 }
 0xd3f   :  { %v1044_v33 = vmul.f32 %v2582_v51, %v1042_v43 }
 0xd41   :  { %v1045_v46 = vpack.c.bf16 %v1044_v33, %v1044_v33 }
 0xd43   :  { %1047 = vrot.lane.b32.xlu0 %v1045_v46, %s2672_s15 }
 0xdaf   :  { %v1096_v34 = vpop.permute.xlu1 %1095 }
 0xdb0   :  { %2376 = vmatmul.mubr.msk.bf16.vlgmr.msra.gmra.mxu0 %vm215_vm3, %v1096_v34 }
 0xdb1   :  { %2388 = vmatpush3.bf16.msra.mxu0 %v2745_v36  ;;  %2391 = vmatprep.mubr.msk.bf16.mxu0 %vm2675_vm0, %v2674_v0 }
 0xdb2   :  { %2389 = vmatprep.subr.bf16.mxu0 %v2674_v0 }
 0xdb5   :  { %v1048_v37 = vpop.permute.xlu0 %1047  ;;  %2390 = vmatpush3.bf16.msra.mxu0 %v2762_v44 }
 0xdb6   :  { %2368 = vmatmul.mubr.msk.bf16.vlgmr.msra.gmra.mxu1 %vm215_vm3, %v1048_v37  ;;  %2403 = vmatprep.subr.bf16.mxu0 %v2674_v0 }
 0xdb7   :  { %2380 = vmatpush3.bf16.msra.mxu1 %v2706_v3  ;;  %2383 = vmatprep.mubr.msk.bf16.mxu1 %vm2675_vm0, %v2674_v0 }
 0xdb8   :  { %2381 = vmatprep.subr.bf16.mxu1 %v2674_v0 }
 0xdbb   :  { %2382 = vmatpush3.bf16.msra.mxu1 %v2721_v10 }
 0xdbc   :  { %2395 = vmatprep.subr.bf16.mxu1 %v2674_v0 }
 0xdbe   :  { %2384 = vmatmul.mubr.msk.bf16.vlgmr.msra.gmra.mxu1 %vm215_vm3, %v1048_v37 }
 0xdbf   :  { %2396 = vmatpush3.bf16.msra.mxu1 %v2759_v42  ;;  %2399 = vmatprep.mubr.msk.bf16.mxu1 %vm2675_vm0, %v2674_v0 }
 0xdc0   :  { %2397 = vmatprep.subr.bf16.mxu1 %v2674_v0 }
 0xdc3   :  { %2398 = vmatpush3.bf16.msra.mxu1 %v2768_v45 }
 0xdc4   :  { %2411 = vmatprep.subr.bf16.mxu1 %v2674_v0 }
 0xe70   :  { %v1134_v3 = vpop.f32.mrf.mxu0 }
 0xe72   :  { %v2377_v47 = vpop.f32.mrf.mxu0 }
 0xe74   :  { %v1137_v48 = vpop.f32.mrf.mxu0 }
 0xe75   :  { %v197_v48 = vadd.f32 %v2802_v53, %v2737_v18 }
 0xe76   :  { %v1086_v39 = vpop.f32.mrf.mxu1  ;;  %v2378_v10 = vpop.f32.mrf.mxu0 }
 0xe77   :  { %v1092_v49 = vadd.f32 %v1086_v39, %v2811_v63 }
 0xe78   :  { %v2369_v50 = vpop.f32.mrf.mxu1 }
 0xe79   :  { %v1140_v40 = vadd.f32 %v1134_v3, %v1092_v49 }
 0xe7a   :  { %v1089_v52 = vpop.f32.mrf.mxu1 }
 0xe7b   :  { %2587 = vtanh.f32 %v1140_v40  ;;  %v2096_v4 = vmul.f32 -1.442695, %v1140_v40 }
 0xe7c   :  { %v2370_v35 = vpop.f32.mrf.mxu1 }
 0xe7e   :  { %v1199_v58 = vpop.f32.mrf.mxu1 }
 0xe7f   :  { %v1205_v59 = vadd.f32 %v1199_v58, %v192_v57 }
 0xe80   :  { %v2385_v60 = vpop.f32.mrf.mxu1 }
 0xe81   :  { %2589 = vtanh.f32 %v1205_v59  ;;  %v2098_v5 = vmul.f32 -1.442695, %v1205_v59 }
 0xe82   :  { %v1202_v61 = vpop.f32.mrf.mxu1  ;;  %2591 = vpow2.f32 %v2096_v4 }
 0xe83   :  { %2593 = vpow2.f32 %v2098_v5 }
 0xe84   :  { %v2386_v62 = vpop.f32.mrf.mxu1 }
 0xe88   :  { %v2588_v1 = vpop.eup %2587 }
 0xe89   :  { %1150 = vrot.lane.b32.xlu1 %v2588_v1, %s2677_s26 }
 0xe8e   :  { %v2590_v2 = vpop.eup %2589 }
 0xe8f   :  { %1215 = vrot.lane.b32.xlu0 %v2590_v2, %s2677_s26  ;;  %v2592_v6 = vpop.eup %2591 }
 0xe90   :  { %v1144_v7 = vadd.f32 1.0, %v2592_v6  ;;  %v2594_v8 = vpop.eup %2593 }
 0xe91   :  { %v1209_v56 = vadd.f32 1.0, %v2594_v8 }
 0xe92   :  { %2595 = vrcp.f32 %v1144_v7 }
 0xe93   :  { %2597 = vrcp.f32 %v1209_v56 }
 0xe9f   :  { %v2596_v9 = vpop.eup %2595 }
 0xea0   :  { %v2598_v14 = vpop.eup %2597  ;;  %v1148_v54 = vmul.f32 %v2596_v9, %v2939_v26 }
 0xea1   :  { %v1213_v22 = vmul.f32 %v2598_v14, %v2943_v29 }
 0xefb   :  { %v1151_v12 = vpop.permute.xlu1 %1150 }
 0xefc   :  { %v1153_v13 = vmul.f32 %v2596_v9, %v1151_v12 }
 0xefe   :  { %1155 = vrot.lane.b32.xlu1 %v1153_v13, %s2677_s26 }
 0xf01   :  { %v1216_v15 = vpop.permute.xlu0 %1215 }
 0xf02   :  { %v1218_v19 = vmul.f32 %v2598_v14, %v1216_v15 }
 0xf04   :  { %1220 = vrot.lane.b32.xlu0 %v1218_v19, %s2677_s26 }
 0xf70   :  { %v1156_v20 = vpop.permute.xlu1 %1155 }
 0xf71   :  { %v2979_v21 = vadd.f32 %v1156_v20, %v1148_v54 }
 0xf73   :  { %2599 = vtanh.f32 %v2979_v21 }
 0xf76   :  { %v1221_v51 = vpop.permute.xlu0 %1220 }
 0xf77   :  { %v2983_v23 = vadd.f32 %v1221_v51, %v1213_v22 }
 0xf79   :  { %2601 = vtanh.f32 %v2983_v23 }
 0xf80   :  { %v2600_v24 = vpop.eup %2599 }
 0xf81   :  { %1161 = vrot.lane.b32.xlu1 %v2600_v24, %s2677_s26 }
 0xf86   :  { %v2602_v17 = vpop.eup %2601 }
 0xf87   :  { %1226 = vrot.lane.b32.xlu0 %v2602_v17, %s2677_s26  ;;  %v2646_v17 = vld [vmem:[#allocation2 + $0x18] sm:$0xff]  }
 0xff3   :  { %v1162_v25 = vpop.permute.xlu1 %1161 }
 0xff4   :  { %v1164_v26 = vmul.f32 %v2596_v9, %v1162_v25  ;;  %v2647_v25 = vld [vmem:[#allocation2 + $0x30] sm:$0xff]  }
 0xff6   :  { %v1278_v27 = vpack.c.bf16 %v1164_v26, %v1164_v26  ;;  %v2648_v26 = vld [vmem:[#allocation2 + $0x28] sm:$0xff]  }
 0xff8   :  { %1280 = vrot.lane.b32.xlu1 %v1278_v27, %s2672_s15 }
 0xff9   :  { %v1227_v28 = vpop.permute.xlu0 %1226 }
 0xffa   :  { %v1229_v31 = vmul.f32 %v2598_v14, %v1227_v28 }
 0xffc   :  { %v1230_v32 = vpack.c.bf16 %v1229_v31, %v1229_v31 }
 0xffe   :  { %1232 = vrot.lane.b32.xlu0 %v1230_v32, %s2672_s15 }
0x106a   :  { %v1281_v29 = vpop.permute.xlu1 %1280 }
0x106b   :  { %2400 = vmatmul.mubr.msk.bf16.vlgmr.msra.gmra.mxu1 %vm215_vm3, %v1281_v29 }
0x106c   :  { %2412 = vmatpush3.bf16.msra.mxu1 %v2745_v36  ;;  %2415 = vmatprep.mubr.msk.bf16.mxu1 %vm2675_vm0, %v2674_v0  ;;  %v3004_v36 = vld [vmem:[#allocation2 + $0x4] sm:$0xff]  }
0x106d   :  { %2413 = vmatprep.subr.bf16.mxu1 %v2674_v0 }
0x1070   :  { %v1233_v38 = vpop.permute.xlu0 %1232  ;;  %2414 = vmatpush3.bf16.msra.mxu1 %v2762_v44 }
0x1071   :  { %2392 = vmatmul.mubr.msk.bf16.vlgmr.msra.gmra.mxu0 %vm215_vm3, %v1233_v38  ;;  %2427 = vmatprep.subr.bf16.mxu1 %v2674_v0 }
0x1072   :  { %2404 = vmatpush3.bf16.msra.mxu0 %v2998_v30  ;;  %2407 = vmatprep.mubr.msk.bf16.mxu0 %vm2675_vm0, %v2674_v0 }
0x1073   :  { %2405 = vmatprep.subr.bf16.mxu0 %v2674_v0 }
0x1076   :  { %2406 = vmatpush3.bf16.msra.mxu0 %v3004_v36 }
0x1077   :  { %2419 = vmatprep.subr.bf16.mxu0 %v2674_v0 }
0x1079   :  { %2408 = vmatmul.mubr.msk.bf16.vlgmr.msra.gmra.mxu0 %vm215_vm3, %v1233_v38 }
0x107a   :  { %2420 = vmatpush3.bf16.msra.mxu0 %v2759_v42  ;;  %2423 = vmatprep.mubr.msk.bf16.mxu0 %vm2675_vm0, %v2674_v0 }
0x107b   :  { %2421 = vmatprep.subr.bf16.mxu0 %v2674_v0 }
0x107e   :  { %2422 = vmatpush3.bf16.msra.mxu0 %v2768_v45 }
0x107f   :  { %2435 = vmatprep.subr.bf16.mxu0 %v2674_v0 }
0x112b   :  { %v1319_v44 = vpop.f32.mrf.mxu1 }
0x112d   :  { %v2401_v41 = vpop.f32.mrf.mxu1 }
0x112f   :  { %v1322_v43 = vpop.f32.mrf.mxu1 }
0x1130   :  { %v200_v43 = vadd.f32 %v2806_v55, %v2737_v18 }
0x1131   :  { %v1271_v33 = vpop.f32.mrf.mxu0  ;;  %v2402_v46 = vpop.f32.mrf.mxu1 }
0x1132   :  { %v1277_v34 = vadd.f32 %v1271_v33, %v2811_v63 }
0x1133   :  { %v2393_v37 = vpop.f32.mrf.mxu0 }
0x1134   :  { %v1325_v3 = vadd.f32 %v1319_v44, %v1277_v34 }
0x1135   :  { %v1274_v47 = vpop.f32.mrf.mxu0 }
0x1136   :  { %2603 = vtanh.f32 %v1325_v3  ;;  %v2101_v35 = vmul.f32 -1.442695, %v1325_v3 }
0x1137   :  { %v2394_v42 = vpop.f32.mrf.mxu0 }
0x1139   :  { %v1384_v39 = vpop.f32.mrf.mxu0 }
0x113a   :  { %v1390_v10 = vadd.f32 %v1384_v39, %v197_v48 }
0x113b   :  { %v2409_v45 = vpop.f32.mrf.mxu0 }
0x113c   :  { %2605 = vtanh.f32 %v1390_v10  ;;  %v2103_v57 = vmul.f32 -1.442695, %v1390_v10 }
0x113d   :  { %v1387_v49 = vpop.f32.mrf.mxu0  ;;  %2607 = vpow2.f32 %v2101_v35 }
0x113e   :  { %2609 = vpow2.f32 %v2103_v57 }
0x113f   :  { %v2410_v50 = vpop.f32.mrf.mxu0 }
0x1143   :  { %v2604_v40 = vpop.eup %2603 }
0x1144   :  { %1335 = vrot.lane.b32.xlu1 %v2604_v40, %s2677_s26 }
0x1149   :  { %v2606_v52 = vpop.eup %2605 }
0x114a   :  { %1400 = vrot.lane.b32.xlu0 %v2606_v52, %s2677_s26  ;;  %v2608_v58 = vpop.eup %2607 }
0x114b   :  { %v1329_v59 = vadd.f32 1.0, %v2608_v58  ;;  %v2610_v60 = vpop.eup %2609 }
0x114c   :  { %v1394_v53 = vadd.f32 1.0, %v2610_v60 }
0x114d   :  { %2611 = vrcp.f32 %v1329_v59 }
0x114e   :  { %2613 = vrcp.f32 %v1394_v53 }
0x115a   :  { %v2612_v61 = vpop.eup %2611 }
0x115b   :  { %v2614_v2 = vpop.eup %2613  ;;  %v1333_v6 = vmul.f32 %v2612_v61, %v2979_v21 }
0x115c   :  { %v1398_v56 = vmul.f32 %v2614_v2, %v2983_v23  ;;  %v2645_v23 = vld [vmem:[#allocation2 + $0x20] sm:$0xff]  }
0x11b6   :  { %v1336_v62 = vpop.permute.xlu1 %1335 }
0x11b7   :  { %v1338_v1 = vmul.f32 %v2612_v61, %v1336_v62 }
0x11b9   :  { %1340 = vrot.lane.b32.xlu1 %v1338_v1, %s2677_s26 }
0x11bc   :  { %v1401_v4 = vpop.permute.xlu0 %1400 }
0x11bd   :  { %v1403_v5 = vmul.f32 %v2614_v2, %v1401_v4 }
0x11bf   :  { %1405 = vrot.lane.b32.xlu0 %v1403_v5, %s2677_s26 }
0x122b   :  { %v1341_v7 = vpop.permute.xlu1 %1340 }
0x122c   :  { %v3023_v8 = vadd.f32 %v1341_v7, %v1333_v6 }
0x122e   :  { %2615 = vtanh.f32 %v3023_v8 }
0x1231   :  { %v1406_v9 = vpop.permute.xlu0 %1405 }
0x1232   :  { %v3027_v12 = vadd.f32 %v1406_v9, %v1398_v56 }
0x1234   :  { %2617 = vtanh.f32 %v3027_v12 }
0x123b   :  { %v2616_v13 = vpop.eup %2615 }
0x123c   :  { %1346 = vrot.lane.b32.xlu1 %v2616_v13, %s2677_s26 }
0x1241   :  { %v2618_v14 = vpop.eup %2617 }
0x1242   :  { %1411 = vrot.lane.b32.xlu0 %v2618_v14, %s2677_s26 }
0x12ae   :  { %v1347_v15 = vpop.permute.xlu1 %1346 }
0x12af   :  { %v1349_v19 = vmul.f32 %v2612_v61, %v1347_v15 }
0x12b1   :  { %v1463_v54 = vpack.c.bf16 %v1349_v19, %v1349_v19 }
0x12b3   :  { %1465 = vrot.lane.b32.xlu1 %v1463_v54, %s2672_s15 }
0x12b4   :  { %v1412_v20 = vpop.permute.xlu0 %1411 }
0x12b5   :  { %v1414_v21 = vmul.f32 %v2614_v2, %v1412_v20 }
0x12b7   :  { %v1415_v22 = vpack.c.bf16 %v1414_v21, %v1414_v21 }
0x12b9   :  { %1417 = vrot.lane.b32.xlu0 %v1415_v22, %s2672_s15 }
0x1325   :  { %v1466_v51 = vpop.permute.xlu1 %1465 }
0x1326   :  { %2424 = vmatmul.mubr.msk.bf16.vlgmr.msra.gmra.mxu0 %vm215_vm3, %v1466_v51 }
0x1327   :  { %2436 = vmatpush3.bf16.msra.mxu0 %v2645_v23  ;;  %2439 = vmatprep.mubr.msk.bf16.mxu0 %vm2675_vm0, %v2674_v0 }
0x1328   :  { %2437 = vmatprep.subr.bf16.mxu0 %v2674_v0 }
0x132b   :  { %v1418_v24 = vpop.permute.xlu0 %1417  ;;  %2438 = vmatpush3.bf16.msra.mxu0 %v2646_v17 }
0x132c   :  { %2416 = vmatmul.mubr.msk.bf16.vlgmr.msra.gmra.mxu1 %vm215_vm3, %v1418_v24  ;;  %2451 = vmatprep.subr.bf16.mxu0 %v2674_v0 }
0x132d   :  { %2428 = vmatpush3.bf16.msra.mxu1 %v2998_v30  ;;  %2431 = vmatprep.mubr.msk.bf16.mxu1 %vm2675_vm0, %v2674_v0 }
0x132e   :  { %2429 = vmatprep.subr.bf16.mxu1 %v2674_v0 }
0x1331   :  { %2430 = vmatpush3.bf16.msra.mxu1 %v3004_v36 }
0x1332   :  { %2443 = vmatprep.subr.bf16.mxu1 %v2674_v0 }
0x1334   :  { %2432 = vmatmul.mubr.msk.bf16.vlgmr.msra.gmra.mxu1 %vm215_vm3, %v1418_v24 }
0x1335   :  { %2444 = vmatpush3.bf16.msra.mxu1 %v2647_v25  ;;  %2447 = vmatprep.mubr.msk.bf16.mxu1 %vm2675_vm0, %v2674_v0 }
0x1336   :  { %2445 = vmatprep.subr.bf16.mxu1 %v2674_v0 }
0x1339   :  { %2446 = vmatpush3.bf16.msra.mxu1 %v2648_v26 }
0x13e6   :  { %v1504_v27 = vpop.f32.mrf.mxu0 }
0x13e8   :  { %v2425_v28 = vpop.f32.mrf.mxu0 }
0x13ea   :  { %v1507_v31 = vpop.f32.mrf.mxu0 }
0x13ec   :  { %v1456_v32 = vpop.f32.mrf.mxu1  ;;  %v2426_v29 = vpop.f32.mrf.mxu0 }
0x13ed   :  { %v1462_v38 = vadd.f32 %v1456_v32, %v2811_v63  ;;  %v2473_v29 = vld [vmem:[#allocation2 + $0x44] sm:$0xff]  }
0x13ee   :  { %v2417_v30 = vpop.f32.mrf.mxu1 }
0x13ef   :  { %v1510_v36 = vadd.f32 %v1504_v27, %v1462_v38  ;;  %v2474_v38 = vld [vmem:[#allocation2 + $0x3c] sm:$0xff]  }
0x13f0   :  { %v1459_v44 = vpop.f32.mrf.mxu1 }
0x13f1   :  { %2619 = vtanh.f32 %v1510_v36  ;;  %v2106_v48 = vmul.f32 -1.442695, %v1510_v36  ;;  %v2475_v36 = vld [vmem:[%s3135_s2 + $0x70] ss:$8 sps:$4 sm:$0xff]   ;;  %v2477_v44 = vld [vmem:[%s3135_s2 + $0x74] ss:$8 sps:$4 sm:$0xff]  }
0x13f2   :  { %v2418_v41 = vpop.f32.mrf.mxu1  ;;  %1873 = vmatprep.subr.bf16.mxu1 %v2477_v44 }
0x13f3   :  { %v2480_v41 = vld [vmem:[%s3135_s2 + $0x64] ss:$8 sps:$4 sm:$0xff]  }
0x13f4   :  { %v1569_v33 = vpop.f32.mrf.mxu1 }
0x13f5   :  { %v1575_v46 = vadd.f32 %v1569_v33, %v200_v43  ;;  %v2483_v43 = vld [vmem:[%s3135_s2 + $0x54] ss:$8 sps:$4 sm:$0xff]   ;;  %v2481_v33 = vld [vmem:[%s3135_s2 + $0x50] ss:$8 sps:$4 sm:$0xff]  }
0x13f6   :  { %v2433_v34 = vpop.f32.mrf.mxu1 }
0x13f7   :  { %2621 = vtanh.f32 %v1575_v46  ;;  %v2108_v39 = vmul.f32 -1.442695, %v1575_v46  ;;  %v2486_v34 = vld [vmem:[%s3135_s2 + $0x44] ss:$8 sps:$4 sm:$0xff]  }
0x13f8   :  { %v1572_v37 = vpop.f32.mrf.mxu1  ;;  %2623 = vpow2.f32 %v2106_v48  ;;  %v2487_v48 = vld [vmem:[%s3135_s2 + $0x30] ss:$8 sps:$4 sm:$0xff]  }
0x13f9   :  { %2625 = vpow2.f32 %v2108_v39  ;;  %v2492_v39 = vld [vmem:[%s3135_s2 + $0x24] ss:$8 sps:$4 sm:$0xff]  }
0x13fa   :  { %v2434_v3 = vpop.f32.mrf.mxu1 }
0x13fe   :  { %v2620_v47 = vpop.eup %2619 }
0x13ff   :  { %1520 = vrot.lane.b32.xlu1 %v2620_v47, %s2677_s26  ;;  %v2484_v47 = vld [vmem:[%s3135_s2 + $0x40] ss:$8 sps:$4 sm:$0xff]  }
0x1404   :  { %v2622_v42 = vpop.eup %2621 }
0x1405   :  { %1585 = vrot.lane.b32.xlu0 %v2622_v42, %s2677_s26  ;;  %v2624_v10 = vpop.eup %2623  ;;  %v2489_v42 = vld [vmem:[%s3135_s2 + $0x34] ss:$8 sps:$4 sm:$0xff]  }
0x1406   :  { %v1514_v45 = vadd.f32 1.0, %v2624_v10  ;;  %v2626_v49 = vpop.eup %2625  ;;  %v2490_v10 = vld [vmem:[%s3135_s2 + $0x20] ss:$8 sps:$4 sm:$0xff]  }
0x1407   :  { %v1579_v18 = vadd.f32 1.0, %v2626_v49  ;;  %v2493_v49 = vld [vmem:[%s3135_s2 + $0x10] ss:$8 sps:$4 sm:$0xff]  }
0x1408   :  { %2627 = vrcp.f32 %v1514_v45  ;;  %v2495_v45 = vld [vmem:[%s3135_s2 + $0x14] ss:$8 sps:$4 sm:$0xff]  }
0x1409   :  { %2629 = vrcp.f32 %v1579_v18 }
0x1415   :  { %v2628_v55 = vpop.eup %2627 }
0x1416   :  { %v2630_v52 = vpop.eup %2629  ;;  %v1518_v58 = vmul.f32 %v2628_v55, %v3023_v8 }
0x1417   :  { %v1583_v53 = vmul.f32 %v2630_v52, %v3027_v12 }
0x1471   :  { %v1521_v50 = vpop.permute.xlu1 %1520 }
0x1472   :  { %v1523_v40 = vmul.f32 %v2628_v55, %v1521_v50  ;;  %v2496_v50 = vld [vmem:[%s3135_s2] ss:$8 sps:$4 sm:$0xff]  }
0x1474   :  { %1525 = vrot.lane.b32.xlu1 %v1523_v40, %s2677_s26  ;;  %v2499_v40 = vld [vmem:[#allocation2 + $0xc8] sm:$0xff]  }
0x1477   :  { %v1586_v35 = vpop.permute.xlu0 %1585 }
0x1478   :  { %v1588_v57 = vmul.f32 %v2630_v52, %v1586_v35  ;;  %v2501_v35 = vld [vmem:[#allocation2 + $0xc0] sm:$0xff]  }
0x147a   :  { %1590 = vrot.lane.b32.xlu0 %v1588_v57, %s2677_s26  ;;  %v2502_v57 = vld [vmem:[#allocation2 + $0x80] sm:$0xff]  }
0x14e6   :  { %v1526_v59 = vpop.permute.xlu1 %1525 }
0x14e7   :  { %v1528_v60 = vadd.f32 %v1526_v59, %v1518_v58  ;;  %v2503_v58 = vld [vmem:[#allocation2 + $0xb8] sm:$0xff]  }
0x14e8   :  { %v2504_v59 = vld [vmem:[#allocation2 + $0x78] sm:$0xff]  }
0x14e9   :  { %2631 = vtanh.f32 %v1528_v60 }
0x14ec   :  { %v1591_v61 = vpop.permute.xlu0 %1590 }
0x14ed   :  { %v1593_v62 = vadd.f32 %v1591_v61, %v1583_v53  ;;  %v2506_v53 = vld [vmem:[#allocation2 + $0x70] sm:$0xff]   ;;  %v2507_v61 = vld [vmem:[#allocation2 + $0xa8] sm:$0xff]  }
0x14ef   :  { %2633 = vtanh.f32 %v1593_v62  ;;  %v2508_v62 = vld [vmem:[#allocation2 + $0x68] sm:$0xff]  }
0x14f6   :  { %v2632_v1 = vpop.eup %2631 }
0x14f7   :  { %1531 = vrot.lane.b32.xlu1 %v2632_v1, %s2677_s26  ;;  %v2509_v1 = vld [vmem:[#allocation2 + $0xa0] sm:$0xff]  }
0x14fc   :  { %v2634_v2 = vpop.eup %2633 }
0x14fd   :  { %1596 = vrot.lane.b32.xlu0 %v2634_v2, %s2677_s26  ;;  %v2510_v2 = vld [vmem:[#allocation2 + $0x60] sm:$0xff]  }
0x1569   :  { %v1532_v4 = vpop.permute.xlu1 %1531 }
0x156a   :  { %v1534_v5 = vmul.f32 %v2628_v55, %v1532_v4  ;;  %v2498_v55 = vld [vmem:[%s3135_s2 + $0x4] ss:$8 sps:$4 sm:$0xff]  }
0x156b   :  { %v50_v4 = vld [vmem:[#allocation2 + $0x4c] sm:$0x1] }
0x156c   :  { %v1648_v6 = vpack.c.bf16 %v1534_v5, %v1534_v5  ;;  %v51_v5 = vunpack.c.l.bf16 %v50_v4 }
0x156e   :  { %1650 = vrot.lane.b32.xlu1 %v1648_v6, %s2672_s15  ;;  %v1724_v6 = vrot.slane %v51_v5, %v2732_v16 }
0x156f   :  { %v1597_v7 = vpop.permute.xlu0 %1596 }
0x1570   :  { %v1599_v8 = vmul.f32 %v2630_v52, %v1597_v7  ;;  %v2500_v52 = vld [vmem:[#allocation2 + $0x88] sm:$0xff]  }
0x1572   :  { %v1600_v56 = vpack.c.bf16 %v1599_v8, %v1599_v8 }
0x1574   :  { %1602 = vrot.lane.b32.xlu0 %v1600_v56, %s2672_s15 }
0x15e0   :  { %v1651_v9 = vpop.permute.xlu1 %1650 }
0x15e1   :  { %2448 = vmatmul.mubr.msk.bf16.vlgmr.msra.gmra.mxu1 %vm215_vm3, %v1651_v9 }
0x15e2   :  { %1905 = vmatprep.mubr.bf16.mxu1 %v2676_v11  ;;  %1874 = vmatpush1.bf16.msra.mxu1 %v2475_v36 }
0x15e3   :  { %1875 = vmatprep.subr.bf16.mxu1 %v2480_v41 }
0x15e6   :  { %v1603_v12 = vpop.permute.xlu0 %1602 }
0x15e7   :  { %2440 = vmatmul.mubr.msk.bf16.vlgmr.msra.gmra.mxu0 %vm215_vm3, %v1603_v12 }
0x15e8   :  { %2455 = vmatprep.mubr.msk.bf16.mxu0 %vm2675_vm0, %v2674_v0  ;;  %2452 = vmatpush3.bf16.msra.mxu0 %v2473_v29 }
0x15e9   :  { %2453 = vmatprep.subr.bf16.mxu0 %v2674_v0  ;;  %v2478_v0 = vld [vmem:[%s3135_s2 + $0x60] ss:$8 sps:$4 sm:$0xff]  }
0x15ea   :  { %1876 = vmatpush1.bf16.msra.mxu1 %v2478_v0 }
0x15eb   :  { %1877 = vmatprep.subr.bf16.mxu1 %v2483_v43 }
0x15ec   :  { %2454 = vmatpush3.bf16.msra.mxu0 %v2474_v38  ;;  %v84_v38 = vld [vmem:[#allocation2 + $0xd0] sm:$0x1] }
0x15ed   :  { %2227 = vmatprep.subr.bf16.mxu0 %v2499_v40 }
0x15ee   :  { %1878 = vmatpush1.bf16.msra.mxu1 %v2481_v33 }
0x15ef   :  { %1879 = vmatprep.subr.bf16.mxu1 %v2486_v34 }
0x15f2   :  { %1880 = vmatpush1.bf16.msra.mxu1 %v2484_v47 }
0x15f3   :  { %1881 = vmatprep.subr.bf16.mxu1 %v2489_v42 }
0x15f6   :  { %1882 = vmatpush1.bf16.msra.mxu1 %v2487_v48 }
0x15f7   :  { %1883 = vmatprep.subr.bf16.mxu1 %v2492_v39 }
0x15fa   :  { %1884 = vmatpush1.bf16.msra.mxu1 %v2490_v10 }
0x15fb   :  { %1885 = vmatprep.subr.bf16.mxu1 %v2495_v45 }
0x15fe   :  { %1886 = vmatpush1.bf16.msra.mxu1 %v2493_v49 }
0x15ff   :  { %1887 = vmatprep.subr.bf16.mxu1 %v2498_v55 }
0x1602   :  { %1888 = vmatpush1.bf16.msra.mxu1 %v2496_v50 }
0x16a1   :  { %v1689_v13 = vpop.f32.mrf.mxu1 }
0x16a3   :  { %v2449_v14 = vpop.f32.mrf.mxu1 }
0x16a5   :  { %v1692_v15 = vpop.f32.mrf.mxu1 }
0x16a6   :  { %v2511_v15 = vld [vmem:[#allocation2 + $0x98] sm:$0xff]  }
0x16a7   :  { %v1641_v19 = vpop.f32.mrf.mxu0  ;;  %v2450_v54 = vpop.f32.mrf.mxu1 }
0x16a8   :  { %v1647_v20 = vadd.f32 %v1641_v19, %v2811_v63  ;;  %v2512_v19 = vld [vmem:[#allocation2 + $0x58] sm:$0xff]   ;;  %v2513_v54 = vld [vmem:[#allocation2 + $0x90] sm:$0xff]  }
0x16a9   :  { %v2441_v21 = vpop.f32.mrf.mxu0 }
0x16aa   :  { %v1695_v22 = vadd.f32 %v1689_v13, %v1647_v20  ;;  %v2514_v20 = vld [vmem:[#allocation2 + $0x50] sm:$0xff]   ;;  %v102_v21 = vld [vmem:[%s3135_s2 + $0x80] sm:$0x11] }
0x16ab   :  { %v1644_v51 = vpop.f32.mrf.mxu0 }
0x16ac   :  { %2635 = vtanh.f32 %v1695_v22  ;;  %v2111_v11 = vmul.f32 -1.442695, %v1695_v22  ;;  %v103_v22 = vunpack.c.l.bf16 %v102_v21  ;;  %v104_v51 = vunpack.c.h.bf16 %v102_v21 }
0x16ad   :  { %v2442_v23 = vpop.f32.mrf.mxu0 }
0x16ae   :  { %2637 = vpow2.f32 %v2111_v11  ;;  %v1788_v23 = vrot.slane %v103_v22, %v2732_v16 }
0x16b9   :  { %v2636_v24 = vpop.eup %2635 }
0x16ba   :  { %1705 = vrot.lane.b32.xlu0 %v2636_v24, %s2677_s26  ;;  %v1792_v24 = vrot.slane %v104_v51, %v2732_v16 }
0x16bb   :  { %v2638_v17 = vpop.eup %2637 }
0x16bc   :  { %v1699_v25 = vadd.f32 1.0, %v2638_v17 }
0x16be   :  { %2639 = vrcp.f32 %v1699_v25 }
0x16cb   :  { %v2640_v26 = vpop.eup %2639 }
0x16cc   :  { %v1703_v31 = vmul.f32 %v2640_v26, %v1528_v60  ;;  %v2505_v60 = vld [vmem:[#allocation2 + $0xb0] sm:$0xff]  }
0x172c   :  { %v1706_v27 = vpop.permute.xlu0 %1705 }
0x172d   :  { %v1708_v28 = vmul.f32 %v2640_v26, %v1706_v27 }
0x172f   :  { %1710 = vrot.lane.b32.xlu1 %v1708_v28, %s2677_s26 }
0x17a1   :  { %v1711_v63 = vpop.permute.xlu1 %1710 }
0x17a2   :  { %v1713_v32 = vadd.f32 %v1711_v63, %v1703_v31 }
0x17a4   :  { %2641 = vtanh.f32 %v1713_v32 }
0x17b1   :  { %v2642_v30 = vpop.eup %2641 }
0x17b2   :  { %1716 = vrot.lane.b32.xlu0 %v2642_v30, %s2677_s26  ;;  %v85_v30 = vunpack.c.l.bf16 %v84_v38 }
0x17b4   :  { %v1921_v44 = vrot.slane %v85_v30, %v2732_v16 }
0x1824   :  { %v1717_v46 = vpop.permute.xlu0 %1716 }
0x1825   :  { %v1719_v37 = vmul.f32 %v2640_v26, %v1717_v46 }
0x1827   :  { %v1720_v3 = vpack.c.bf16 %v1719_v37, %v1719_v37 }
0x1829   :  { %1726 = vrot.lane.b32.xlu1 %v1720_v3, %s2672_s15 }
0x189b   :  { %v1727_v18 = vpop.permute.xlu1 %1726 }
0x189c   :  { %2456 = vmatmul.mubr.msk.bf16.vlgmr.msra.gmra.mxu0 %vm215_vm3, %v1727_v18 }
0x189d   :  { %2228 = vmatpush3.bf16.msra.mxu0 %v2500_v52 }
0x189e   :  { %2229 = vmatprep.subr.bf16.mxu0 %v2501_v35 }
0x18a1   :  { %2230 = vmatpush3.bf16.msra.mxu0 %v2502_v57 }
0x18a2   :  { %2231 = vmatprep.subr.bf16.mxu0 %v2503_v58 }
0x18a5   :  { %2232 = vmatpush3.bf16.msra.mxu0 %v2504_v59 }
0x18a6   :  { %2233 = vmatprep.subr.bf16.mxu0 %v2505_v60 }
0x18a9   :  { %2234 = vmatpush3.bf16.msra.mxu0 %v2506_v53 }
0x18aa   :  { %2235 = vmatprep.subr.bf16.mxu0 %v2507_v61 }
0x18ad   :  { %2236 = vmatpush3.bf16.msra.mxu0 %v2508_v62 }
0x18ae   :  { %2237 = vmatprep.subr.bf16.mxu0 %v2509_v1 }
0x18b1   :  { %2238 = vmatpush3.bf16.msra.mxu0 %v2510_v2 }
0x18b2   :  { %2239 = vmatprep.subr.bf16.mxu0 %v2511_v15 }
0x18b5   :  { %2240 = vmatpush3.bf16.msra.mxu0 %v2512_v19 }
0x18b6   :  { %2241 = vmatprep.subr.bf16.mxu0 %v2513_v54 }
0x18b9   :  { %2242 = vmatpush3.bf16.msra.mxu0 %v2514_v20 }
0x195c   :  { %v1777_v7 = vpop.f32.mrf.mxu0 }
0x195d   :  { %v1778_v8 = vadd.f32 %v1777_v7, %v1724_v6 }
0x195e   :  { %v2457_v56 = vpop.f32.mrf.mxu0 }
0x195f   :  { %v1783_v9 = vmax.f32 %v1778_v8, 0.0 }
0x1960   :  { %v1780_v12 = vpop.f32.mrf.mxu0 }
0x1961   :  { %v1784_v13 = vpack.c.bf16 %v1783_v9, %v1783_v9 }
0x1962   :  { %v2458_v14 = vpop.f32.mrf.mxu0 }
0x1963   :  { %1906 = vmatmul.mubr.bf16.vlgmr.msra.gmra.mxu1 %v1784_v13 }
0x1a23   :  { %v1907_v11 = vpop.f32.mrf.mxu1 }
0x1a24   :  { %v1908_v17 = vadd.f32 %v1907_v11, %v1788_v23 }
0x1a25   :  { %v1909_v25 = vpop.f32.mrf.mxu1 }
0x1a26   :  { %v1910_v26 = vadd.f32 %v1909_v25, %v1792_v24  ;;  %v1914_v27 = vmax.f32 %v1908_v17, 0.0 }
0x1a27   :  { %v1911_v28 = vpop.f32.mrf.mxu1 }
0x1a28   :  { %v1915_v31 = vmax.f32 %v1910_v26, 0.0  ;;  %v1916_v29 = vpack.c.bf16 %v1914_v27, %v1914_v27 }
0x1a29   :  { %v1912_v63 = vpop.f32.mrf.mxu1 }
0x1a2a   :  { %v1917_v32 = vpack.c.bf16 %v1915_v31, %v1915_v31 }
0x1a2c   :  { %2050 = vmatprep.mubr.bf16.mxu0 %v1917_v32 }
0x1a2d   :  { %2051 = vmatmul.mubr.bf16.vlgmr.msra.gmra.mxu0 %v1916_v29 }
0x1aed   :  { %v2243_v36 = vpop.f32.mrf.mxu0 }
0x1aef   :  { %v2244_v41 = vpop.f32.mrf.mxu0 }
0x1af0   :  { %v2245_v0 = vadd.f32 %v2244_v41, %v2243_v36 }
0x1af1   :  { %v2246_v43 = vpop.f32.mrf.mxu0 }
0x1af2   :  { %v2053_v33 = vadd.f32 %v2245_v0, %v1921_v44 }
0x1af3   :  { %v2247_v46 = vpop.f32.mrf.mxu0 }
0x1af4   :  { %2058 = vst [vmem:[%s3136_s3] sm:$0xff] %v2053_v33 }
0x1af5   :  { %2063 = vsyncpa [#allocation3], 1 }

</bundles_post_ra>
